<compile_context>
chip_gen: v5e
topology: v5e:2x2
jax: 0.10.0
libtpu: 0.0.40
codegen_flags: <defaults>
</compile_context>

<pallas_src>
import math
import functools

import jax
import jax.numpy as jnp
from jax.experimental import pallas as pl
from jax.experimental.pallas import tpu as pltpu

EPS = 1e-5


# ----------------------------- Pallas kernels ------------------------------

def _transformer_block_kernel(x_ref, ln1s_ref, ln1b_ref, wqkv_ref, bqkv_ref,
                              wo_ref, bo_ref, ln2s_ref, ln2b_ref,
                              w1_ref, b1_ref, w2_ref, b2_ref, o_ref,
                              *, n_heads):
    """Whole transformer block for one batch element (grid iterates over batch)."""
    x = x_ref[0].astype(jnp.float32)                  # (S, D)
    S, D = x.shape
    Dh = D // n_heads
    wdt = wqkv_ref.dtype                              # MXU input dtype (bf16 if params bf16)

    # ---- LayerNorm 1 (f32 elementwise; unbiased=False variance) ----
    mean = jnp.mean(x, axis=-1, keepdims=True)
    var = jnp.mean((x - mean) ** 2, axis=-1, keepdims=True)
    xn = (x - mean) * jax.lax.rsqrt(var + EPS)
    xn = ln1s_ref[...].astype(jnp.float32) * xn + ln1b_ref[...].astype(jnp.float32)

    # ---- fused QKV projection: single (S,D)@(D,3D) MXU pass ----
    qkv = jnp.dot(xn.astype(wdt), wqkv_ref[...],
                  preferred_element_type=jnp.float32) + bqkv_ref[...].astype(jnp.float32)
    q = qkv[:, 0 * D:1 * D]
    k = qkv[:, 1 * D:2 * D]
    v = qkv[:, 2 * D:3 * D]

    # ---- causal multi-head attention (mask hoisted out of the head loop) ----
    row = jax.lax.broadcasted_iota(jnp.int32, (S, S), 0)
    col = jax.lax.broadcasted_iota(jnp.int32, (S, S), 1)
    causal = col > row                                # triu(diagonal=1) -> masked
    inv_sqrt_dh = jnp.float32(1.0 / math.sqrt(Dh))

    ctx_heads = []
    for h in range(n_heads):                          # static unroll (small H)
        sl = slice(h * Dh, (h + 1) * Dh)
        q_h, k_h, v_h = q[:, sl], k[:, sl], v[:, sl]
        s_h = jnp.dot(q_h, k_h.T, preferred_element_type=jnp.float32) * inv_sqrt_dh
        s_h = jnp.where(causal, -jnp.inf, s_h)
        m = jnp.max(s_h, axis=-1, keepdims=True)
        p = jnp.exp(s_h - m)
        w_h = p * pl.reciprocal(jnp.sum(p, axis=-1, keepdims=True), approx=True)
        ctx_heads.append(jnp.dot(w_h, v_h, preferred_element_type=jnp.float32))
    ctx = jnp.concatenate(ctx_heads, axis=-1)         # (S, D)

    # ---- output projection + residual (dropout = identity) ----
    attn_out = jnp.dot(ctx.astype(wdt), wo_ref[...],
                       preferred_element_type=jnp.float32) + bo_ref[...].astype(jnp.float32)
    x1 = x + attn_out

    # ---- LayerNorm 2 ----
    mean2 = jnp.mean(x1, axis=-1, keepdims=True)
    var2 = jnp.mean((x1 - mean2) ** 2, axis=-1, keepdims=True)
    x1n = (x1 - mean2) * jax.lax.rsqrt(var2 + EPS)
    x1n = ln2s_ref[...].astype(jnp.float32) * x1n + ln2b_ref[...].astype(jnp.float32)

    # ---- feed-forward: Linear -> tanh-GELU -> Linear, + residual ----
    hdn = jnp.dot(x1n.astype(wdt), w1_ref[...],
                  preferred_element_type=jnp.float32) + b1_ref[...].astype(jnp.float32)
    c = jnp.float32(math.sqrt(2.0 / math.pi))
    hdn = 0.5 * hdn * (1.0 + jnp.tanh(c * (hdn + 0.044715 * (hdn ** 3))))
    ff = jnp.dot(hdn.astype(wdt), w2_ref[...],
                 preferred_element_type=jnp.float32) + b2_ref[...].astype(jnp.float32)

    o_ref[0] = (x1 + ff).astype(o_ref.dtype)


def _final_norm_head_kernel(x_ref, s_ref, b_ref, w_ref, o_ref):
    """Fused final LayerNorm + lm-head matmul tile."""
    x = x_ref[...].astype(jnp.float32)
    mean = jnp.mean(x, axis=-1, keepdims=True)
    var = jnp.mean((x - mean) ** 2, axis=-1, keepdims=True)
    xn = (x - mean) * jax.lax.rsqrt(var + EPS)
    xn = s_ref[...].astype(jnp.float32) * xn + b_ref[...].astype(jnp.float32)
    o_ref[...] = jnp.dot(xn.astype(w_ref.dtype), w_ref[...],
                         preferred_element_type=jnp.float32).astype(o_ref.dtype)


# --------------------------- Pallas call wrappers ---------------------------

def transformer_block(p, x, n_heads):
    B, S, D = x.shape
    kernel = functools.partial(_transformer_block_kernel, n_heads=n_heads)
    fixed2d = lambda b: (0, 0)                        # weights: constant block index
    return pl.pallas_call(
        kernel,
        out_shape=jax.ShapeDtypeStruct((B, S, D), x.dtype),
        grid=(B,),
        in_specs=[
            pl.BlockSpec((1, S, D), lambda b: (b, 0, 0)),   # x (one batch element)
            pl.BlockSpec((1, D), fixed2d),                  # ln1 scale
            pl.BlockSpec((1, D), fixed2d),                  # ln1 shift
            pl.BlockSpec((D, 3 * D), fixed2d),              # fused W_qkv
            pl.BlockSpec((1, 3 * D), fixed2d),              # fused b_qkv
            pl.BlockSpec((D, D), fixed2d),                  # W_o
            pl.BlockSpec((1, D), fixed2d),                  # b_o
            pl.BlockSpec((1, D), fixed2d),                  # ln2 scale
            pl.BlockSpec((1, D), fixed2d),                  # ln2 shift
            pl.BlockSpec((D, 4 * D), fixed2d),              # ff W1
            pl.BlockSpec((1, 4 * D), fixed2d),              # ff b1
            pl.BlockSpec((4 * D, D), fixed2d),              # ff W2
            pl.BlockSpec((1, D), fixed2d),                  # ff b2
        ],
        out_specs=pl.BlockSpec((1, S, D), lambda b: (b, 0, 0)),
        compiler_params=pltpu.CompilerParams(dimension_semantics=("parallel",)),
    )(x,
      p["ln1_scale"].reshape(1, D), p["ln1_shift"].reshape(1, D),
      p["w_qkv"], p["b_qkv"].reshape(1, 3 * D),
      p["wo"], p["bo"].reshape(1, D),
      p["ln2_scale"].reshape(1, D), p["ln2_shift"].reshape(1, D),
      p["ff_w1"], p["ff_b1"].reshape(1, 4 * D),
      p["ff_w2"], p["ff_b2"].reshape(1, D))


def _pick_row_tile(m):
    """Row tile: multiple of 8, and >=2 grid steps when possible (megacore)."""
    if m % 8 != 0:
        return m
    tm = max(8, min(256, m // 2))
    while m % tm != 0:
        tm -= 8
    return tm


def _pick_vocab_tile(v):
    """Vocab tile: lane-dense multiple of 128 (caps VMEM at realistic vocab sizes)."""
    if v % 128 != 0:
        return v
    tn = min(512, v)
    while v % tn != 0:
        tn -= 128
    return tn


def final_norm_and_head(x2d, scale, shift, w):
    M, D = x2d.shape
    _, V = w.shape
    tm = _pick_row_tile(M)
    tn = _pick_vocab_tile(V)
    return pl.pallas_call(
        _final_norm_head_kernel,
        out_shape=jax.ShapeDtypeStruct((M, V), x2d.dtype),
        grid=(M // tm, V // tn),
        in_specs=[
            pl.BlockSpec((tm, D), lambda i, j: (i, 0)),
            pl.BlockSpec((1, D), lambda i, j: (0, 0)),
            pl.BlockSpec((1, D), lambda i, j: (0, 0)),
            pl.BlockSpec((D, tn), lambda i, j: (0, j)),
        ],
        out_specs=pl.BlockSpec((tm, tn), lambda i, j: (i, j)),
        compiler_params=pltpu.CompilerParams(
            dimension_semantics=("parallel", "parallel")),
    )(x2d, scale.reshape(1, D), shift.reshape(1, D), w)


# ------------------------------ model forward -------------------------------

def gpt_forward(params, in_idx, config):
    B, S = in_idx.shape
    D = config["emb_dim"]
    V = config["vocab_size"]

    # embedding lookups kept as plain-JAX glue (gather); drop_emb = identity (eval)
    x = params["tok_emb"][in_idx] + params["pos_emb"][:S][None, :, :]

    for blk in params["blocks"]:
        x = transformer_block(blk, x, config["n_heads"])

    logits = final_norm_and_head(x.reshape(B * S, D),
                                 params["final_scale"], params["final_shift"],
                                 params["out_head_w"])
    return logits.reshape(B, S, V)


# ------------------------------ parameter init -------------------------------

def init_params(key, config, dtype=jnp.float32):
    D = config["emb_dim"]
    V = config["vocab_size"]
    C = config["context_length"]
    L = config["n_layers"]
    std = 0.02

    def nrm(k, shape):
        return (std * jax.random.normal(k, shape)).astype(dtype)

    keys = jax.random.split(key, 3 + L)
    params = {
        "tok_emb": nrm(keys[0], (V, D)),
        "pos_emb": nrm(keys[1], (C, D)),
        "out_head_w": nrm(keys[2], (D, V)),
        "final_scale": jnp.ones((D,), dtype),
        "final_shift": jnp.zeros((D,), dtype),
        "blocks": [],
    }
    for l in range(L):
        ks = jax.random.split(keys[3 + l], 8)
        blk = {
            "ln1_scale": jnp.ones((D,), dtype),
            "ln1_shift": jnp.zeros((D,), dtype),
            "ln2_scale": jnp.ones((D,), dtype),
            "ln2_shift": jnp.zeros((D,), dtype),
            # fused Q/K/V projection: [W_q | W_k | W_v] -> (D, 3D)
            "w_qkv": jnp.concatenate(
                [nrm(ks[0], (D, D)), nrm(ks[1], (D, D)), nrm(ks[2], (D, D))], axis=1),
            "b_qkv": jnp.zeros((3 * D,), dtype),
            "wo": nrm(ks[3], (D, D)), "bo": jnp.zeros((D,), dtype),
            "ff_w1": nrm(ks[4], (D, 4 * D)), "ff_b1": jnp.zeros((4 * D,), dtype),
            "ff_w2": nrm(ks[5], (4 * D, D)), "ff_b2": jnp.zeros((D,), dtype),
        }
        params["blocks"].append(blk)
    return params


# ----------------------------------- main ------------------------------------

if __name__ == "__main__":
    config = {
        "vocab_size": 128,
        "emb_dim": 64,
        "context_length": 16,
        "contex_length": 16,     # (sic) key used by the reference TransformerBlock
        "drop_rate": 0.0,
        "n_layers": 2,
        "n_heads": 4,
        "qkv_bias": True,
    }
    B, S = 2, 8

    key = jax.random.PRNGKey(0)
    pkey, ikey = jax.random.split(key)
    # f32 params match the PyTorch reference; passing bf16 params here would drive
    # the MXU in bf16 with f32 accumulation (LN/softmax/GELU stay f32 regardless).
    params = init_params(pkey, config, dtype=jnp.float32)
    in_idx = jax.random.randint(ikey, (B, S), 0, config["vocab_size"], dtype=jnp.int32)

    fwd = jax.jit(lambda p, idx: gpt_forward(p, idx, config))
    logits = jax.block_until_ready(fwd(params, in_idx))

    assert logits.shape == (B, S, config["vocab_size"])
    assert bool(jnp.all(jnp.isfinite(logits)))
    # TODO(synk): dropout is implemented as identity (eval mode); training-mode
    # stochastic dropout would use pltpu.prng_seed/prng_random_bits inside the kernels.
    print("KERNEL_OK")
</pallas_src>

<mosaic_0001>
module attributes {stable_mosaic.version = 11 : i64} {
  func.func @_transformer_block_kernel(%arg0: i32, %arg1: memref<1x8x64xf32, #tpu.memory_space<vmem>>, %arg2: memref<1x64xf32, #tpu.memory_space<vmem>>, %arg3: memref<1x64xf32, #tpu.memory_space<vmem>>, %arg4: memref<64x192xf32, #tpu.memory_space<vmem>>, %arg5: memref<1x192xf32, #tpu.memory_space<vmem>>, %arg6: memref<64x64xf32, #tpu.memory_space<vmem>>, %arg7: memref<1x64xf32, #tpu.memory_space<vmem>>, %arg8: memref<1x64xf32, #tpu.memory_space<vmem>>, %arg9: memref<1x64xf32, #tpu.memory_space<vmem>>, %arg10: memref<64x256xf32, #tpu.memory_space<vmem>>, %arg11: memref<1x256xf32, #tpu.memory_space<vmem>>, %arg12: memref<256x64xf32, #tpu.memory_space<vmem>>, %arg13: memref<1x64xf32, #tpu.memory_space<vmem>>, %arg14: memref<1x8x64xf32, #tpu.memory_space<vmem>>) attributes {dimension_semantics = [#tpu.dimension_semantics<parallel>], iteration_bounds = array<i64: 2>, scalar_prefetch = 0 : i64, scratch_operands = 0 : i64, tpu.core_type = #tpu.core_type<tc>, window_params = [{transform_indices = @transform_0, window_bounds = array<i64: 1, 8, 64>}, {pipeline_mode = #tpu.pipeline_mode<synchronous>, transform_indices = @transform_1, window_bounds = array<i64: 1, 64>}, {pipeline_mode = #tpu.pipeline_mode<synchronous>, transform_indices = @transform_2, window_bounds = array<i64: 1, 64>}, {pipeline_mode = #tpu.pipeline_mode<synchronous>, transform_indices = @transform_3, window_bounds = array<i64: 64, 192>}, {pipeline_mode = #tpu.pipeline_mode<synchronous>, transform_indices = @transform_4, window_bounds = array<i64: 1, 192>}, {pipeline_mode = #tpu.pipeline_mode<synchronous>, transform_indices = @transform_5, window_bounds = array<i64: 64, 64>}, {pipeline_mode = #tpu.pipeline_mode<synchronous>, transform_indices = @transform_6, window_bounds = array<i64: 1, 64>}, {pipeline_mode = #tpu.pipeline_mode<synchronous>, transform_indices = @transform_7, window_bounds = array<i64: 1, 64>}, {pipeline_mode = #tpu.pipeline_mode<synchronous>, transform_indices = @transform_8, window_bounds = array<i64: 1, 64>}, {pipeline_mode = #tpu.pipeline_mode<synchronous>, transform_indices = @transform_9, window_bounds = array<i64: 64, 256>}, {pipeline_mode = #tpu.pipeline_mode<synchronous>, transform_indices = @transform_10, window_bounds = array<i64: 1, 256>}, {pipeline_mode = #tpu.pipeline_mode<synchronous>, transform_indices = @transform_11, window_bounds = array<i64: 256, 64>}, {pipeline_mode = #tpu.pipeline_mode<synchronous>, transform_indices = @transform_12, window_bounds = array<i64: 1, 64>}, {transform_indices = @transform_13, window_bounds = array<i64: 1, 8, 64>}]} {
    %c0 = arith.constant 0 : index
    %c0_0 = arith.constant 0 : index
    %c0_1 = arith.constant 0 : index
    %0 = vector.load %arg1[%c0, %c0_0, %c0_1] : memref<1x8x64xf32, #tpu.memory_space<vmem>>, vector<1x8x64xf32>
    %1 = vector.shape_cast %0 : vector<1x8x64xf32> to vector<8x64xf32>
    %cst = arith.constant dense<0.000000e+00> : vector<8xf32>
    %2 = vector.multi_reduction <add>, %1, %cst [1] : vector<8x64xf32> to vector<8xf32>
    %3 = vector.shape_cast %2 : vector<8xf32> to vector<8x1xf32>
    %cst_2 = arith.constant 6.400000e+01 : f32
    %4 = vector.broadcast %cst_2 : f32 to vector<8x1xf32>
    %5 = arith.divf %3, %4 : vector<8x1xf32>
    %6 = vector.broadcast %5 : vector<8x1xf32> to vector<8x64xf32>
    %7 = arith.subf %1, %6 : vector<8x64xf32>
    %8 = arith.mulf %7, %7 : vector<8x64xf32>
    %cst_3 = arith.constant dense<0.000000e+00> : vector<8xf32>
    %9 = vector.multi_reduction <add>, %8, %cst_3 [1] : vector<8x64xf32> to vector<8xf32>
    %10 = vector.shape_cast %9 : vector<8xf32> to vector<8x1xf32>
    %cst_4 = arith.constant 6.400000e+01 : f32
    %11 = vector.broadcast %cst_4 : f32 to vector<8x1xf32>
    %12 = arith.divf %10, %11 : vector<8x1xf32>
    %13 = vector.broadcast %5 : vector<8x1xf32> to vector<8x64xf32>
    %14 = arith.subf %1, %13 : vector<8x64xf32>
    %cst_5 = arith.constant 9.99999974E-6 : f32
    %15 = vector.broadcast %cst_5 : f32 to vector<8x1xf32>
    %16 = arith.addf %12, %15 : vector<8x1xf32>
    %17 = math.rsqrt %16 : vector<8x1xf32>
    %18 = vector.broadcast %17 : vector<8x1xf32> to vector<8x64xf32>
    %19 = arith.mulf %14, %18 : vector<8x64xf32>
    %c0_6 = arith.constant 0 : index
    %c0_7 = arith.constant 0 : index
    %20 = vector.load %arg2[%c0_6, %c0_7] : memref<1x64xf32, #tpu.memory_space<vmem>>, vector<1x64xf32>
    %21 = vector.broadcast %20 : vector<1x64xf32> to vector<8x64xf32>
    %22 = arith.mulf %21, %19 : vector<8x64xf32>
    %c0_8 = arith.constant 0 : index
    %c0_9 = arith.constant 0 : index
    %23 = vector.load %arg3[%c0_8, %c0_9] : memref<1x64xf32, #tpu.memory_space<vmem>>, vector<1x64xf32>
    %24 = vector.broadcast %23 : vector<1x64xf32> to vector<8x64xf32>
    %25 = arith.addf %22, %24 : vector<8x64xf32>
    %c0_10 = arith.constant 0 : index
    %c0_11 = arith.constant 0 : index
    %26 = vector.load %arg4[%c0_10, %c0_11] : memref<64x192xf32, #tpu.memory_space<vmem>>, vector<64x192xf32>
    %cst_12 = arith.constant dense<0.000000e+00> : vector<8x192xf32>
    %27 = tpu.matmul %25, %26, %cst_12 {dimension_numbers = #tpu.dot_dimension_numbers<[1], [0], [0], [1], [0, 0, 1, 1], [], []>} : vector<8x64xf32>, vector<64x192xf32>, vector<8x192xf32> -> vector<8x192xf32>
    %c0_13 = arith.constant 0 : index
    %c0_14 = arith.constant 0 : index
    %28 = vector.load %arg5[%c0_13, %c0_14] : memref<1x192xf32, #tpu.memory_space<vmem>>, vector<1x192xf32>
    %29 = vector.broadcast %28 : vector<1x192xf32> to vector<8x192xf32>
    %30 = arith.addf %27, %29 : vector<8x192xf32>
    %31 = vector.extract_strided_slice %30 {offsets = [0, 0], sizes = [8, 64], strides = [1, 1]} : vector<8x192xf32> to vector<8x64xf32>
    %32 = vector.extract_strided_slice %30 {offsets = [0, 64], sizes = [8, 64], strides = [1, 1]} : vector<8x192xf32> to vector<8x64xf32>
    %33 = vector.extract_strided_slice %30 {offsets = [0, 128], sizes = [8, 64], strides = [1, 1]} : vector<8x192xf32> to vector<8x64xf32>
    %34 = tpu.iota {dimensions = array<i32: 0>} : vector<8x8xi32>
    %35 = tpu.iota {dimensions = array<i32: 1>} : vector<8x8xi32>
    %36 = arith.cmpi sgt, %35, %34 : vector<8x8xi32>
    %37 = vector.extract_strided_slice %31 {offsets = [0, 0], sizes = [8, 16], strides = [1, 1]} : vector<8x64xf32> to vector<8x16xf32>
    %38 = vector.extract_strided_slice %32 {offsets = [0, 0], sizes = [8, 16], strides = [1, 1]} : vector<8x64xf32> to vector<8x16xf32>
    %39 = vector.extract_strided_slice %33 {offsets = [0, 0], sizes = [8, 16], strides = [1, 1]} : vector<8x64xf32> to vector<8x16xf32>
    %40 = tpu.transpose %38, [1, 0] : vector<8x16xf32> -> vector<16x8xf32>
    %cst_15 = arith.constant dense<0.000000e+00> : vector<8x8xf32>
    %41 = tpu.matmul %37, %40, %cst_15 {dimension_numbers = #tpu.dot_dimension_numbers<[1], [0], [0], [1], [0, 0, 1, 1], [], []>} : vector<8x16xf32>, vector<16x8xf32>, vector<8x8xf32> -> vector<8x8xf32>
    %cst_16 = arith.constant 2.500000e-01 : f32
    %42 = vector.broadcast %cst_16 : f32 to vector<8x8xf32>
    %43 = arith.mulf %41, %42 : vector<8x8xf32>
    %cst_17 = arith.constant 0xFF800000 : f32
    %44 = vector.broadcast %cst_17 : f32 to vector<8x8xf32>
    %45 = arith.select %36, %44, %43 : vector<8x8xi1>, vector<8x8xf32>
    %cst_18 = arith.constant dense<0xFF800000> : vector<8xf32>
    %46 = vector.multi_reduction <maximumf>, %45, %cst_18 [1] : vector<8x8xf32> to vector<8xf32>
    %47 = vector.shape_cast %46 : vector<8xf32> to vector<8x1xf32>
    %48 = vector.broadcast %47 : vector<8x1xf32> to vector<8x8xf32>
    %49 = arith.subf %45, %48 : vector<8x8xf32>
    %50 = math.exp %49 : vector<8x8xf32>
    %cst_19 = arith.constant dense<0.000000e+00> : vector<8xf32>
    %51 = vector.multi_reduction <add>, %50, %cst_19 [1] : vector<8x8xf32> to vector<8xf32>
    %52 = vector.shape_cast %51 : vector<8xf32> to vector<8x1xf32>
    %53 = tpu.reciprocal %52 {approx = true} : vector<8x1xf32> -> vector<8x1xf32>
    %54 = vector.broadcast %53 : vector<8x1xf32> to vector<8x8xf32>
    %55 = arith.mulf %50, %54 : vector<8x8xf32>
    %cst_20 = arith.constant dense<0.000000e+00> : vector<8x16xf32>
    %56 = tpu.matmul %55, %39, %cst_20 {dimension_numbers = #tpu.dot_dimension_numbers<[1], [0], [0], [1], [0, 0, 1, 1], [], []>} : vector<8x8xf32>, vector<8x16xf32>, vector<8x16xf32> -> vector<8x16xf32>
    %57 = vector.extract_strided_slice %31 {offsets = [0, 16], sizes = [8, 16], strides = [1, 1]} : vector<8x64xf32> to vector<8x16xf32>
    %58 = vector.extract_strided_slice %32 {offsets = [0, 16], sizes = [8, 16], strides = [1, 1]} : vector<8x64xf32> to vector<8x16xf32>
    %59 = vector.extract_strided_slice %33 {offsets = [0, 16], sizes = [8, 16], strides = [1, 1]} : vector<8x64xf32> to vector<8x16xf32>
    %60 = tpu.transpose %58, [1, 0] : vector<8x16xf32> -> vector<16x8xf32>
    %cst_21 = arith.constant dense<0.000000e+00> : vector<8x8xf32>
    %61 = tpu.matmul %57, %60, %cst_21 {dimension_numbers = #tpu.dot_dimension_numbers<[1], [0], [0], [1], [0, 0, 1, 1], [], []>} : vector<8x16xf32>, vector<16x8xf32>, vector<8x8xf32> -> vector<8x8xf32>
    %cst_22 = arith.constant 2.500000e-01 : f32
    %62 = vector.broadcast %cst_22 : f32 to vector<8x8xf32>
    %63 = arith.mulf %61, %62 : vector<8x8xf32>
    %cst_23 = arith.constant 0xFF800000 : f32
    %64 = vector.broadcast %cst_23 : f32 to vector<8x8xf32>
    %65 = arith.select %36, %64, %63 : vector<8x8xi1>, vector<8x8xf32>
    %cst_24 = arith.constant dense<0xFF800000> : vector<8xf32>
    %66 = vector.multi_reduction <maximumf>, %65, %cst_24 [1] : vector<8x8xf32> to vector<8xf32>
    %67 = vector.shape_cast %66 : vector<8xf32> to vector<8x1xf32>
    %68 = vector.broadcast %67 : vector<8x1xf32> to vector<8x8xf32>
    %69 = arith.subf %65, %68 : vector<8x8xf32>
    %70 = math.exp %69 : vector<8x8xf32>
    %cst_25 = arith.constant dense<0.000000e+00> : vector<8xf32>
    %71 = vector.multi_reduction <add>, %70, %cst_25 [1] : vector<8x8xf32> to vector<8xf32>
    %72 = vector.shape_cast %71 : vector<8xf32> to vector<8x1xf32>
    %73 = tpu.reciprocal %72 {approx = true} : vector<8x1xf32> -> vector<8x1xf32>
    %74 = vector.broadcast %73 : vector<8x1xf32> to vector<8x8xf32>
    %75 = arith.mulf %70, %74 : vector<8x8xf32>
    %cst_26 = arith.constant dense<0.000000e+00> : vector<8x16xf32>
    %76 = tpu.matmul %75, %59, %cst_26 {dimension_numbers = #tpu.dot_dimension_numbers<[1], [0], [0], [1], [0, 0, 1, 1], [], []>} : vector<8x8xf32>, vector<8x16xf32>, vector<8x16xf32> -> vector<8x16xf32>
    %77 = vector.extract_strided_slice %31 {offsets = [0, 32], sizes = [8, 16], strides = [1, 1]} : vector<8x64xf32> to vector<8x16xf32>
    %78 = vector.extract_strided_slice %32 {offsets = [0, 32], sizes = [8, 16], strides = [1, 1]} : vector<8x64xf32> to vector<8x16xf32>
    %79 = vector.extract_strided_slice %33 {offsets = [0, 32], sizes = [8, 16], strides = [1, 1]} : vector<8x64xf32> to vector<8x16xf32>
    %80 = tpu.transpose %78, [1, 0] : vector<8x16xf32> -> vector<16x8xf32>
    %cst_27 = arith.constant dense<0.000000e+00> : vector<8x8xf32>
    %81 = tpu.matmul %77, %80, %cst_27 {dimension_numbers = #tpu.dot_dimension_numbers<[1], [0], [0], [1], [0, 0, 1, 1], [], []>} : vector<8x16xf32>, vector<16x8xf32>, vector<8x8xf32> -> vector<8x8xf32>
    %cst_28 = arith.constant 2.500000e-01 : f32
    %82 = vector.broadcast %cst_28 : f32 to vector<8x8xf32>
    %83 = arith.mulf %81, %82 : vector<8x8xf32>
    %cst_29 = arith.constant 0xFF800000 : f32
    %84 = vector.broadcast %cst_29 : f32 to vector<8x8xf32>
    %85 = arith.select %36, %84, %83 : vector<8x8xi1>, vector<8x8xf32>
    %cst_30 = arith.constant dense<0xFF800000> : vector<8xf32>
    %86 = vector.multi_reduction <maximumf>, %85, %cst_30 [1] : vector<8x8xf32> to vector<8xf32>
    %87 = vector.shape_cast %86 : vector<8xf32> to vector<8x1xf32>
    %88 = vector.broadcast %87 : vector<8x1xf32> to vector<8x8xf32>
    %89 = arith.subf %85, %88 : vector<8x8xf32>
    %90 = math.exp %89 : vector<8x8xf32>
    %cst_31 = arith.constant dense<0.000000e+00> : vector<8xf32>
    %91 = vector.multi_reduction <add>, %90, %cst_31 [1] : vector<8x8xf32> to vector<8xf32>
    %92 = vector.shape_cast %91 : vector<8xf32> to vector<8x1xf32>
    %93 = tpu.reciprocal %92 {approx = true} : vector<8x1xf32> -> vector<8x1xf32>
    %94 = vector.broadcast %93 : vector<8x1xf32> to vector<8x8xf32>
    %95 = arith.mulf %90, %94 : vector<8x8xf32>
    %cst_32 = arith.constant dense<0.000000e+00> : vector<8x16xf32>
    %96 = tpu.matmul %95, %79, %cst_32 {dimension_numbers = #tpu.dot_dimension_numbers<[1], [0], [0], [1], [0, 0, 1, 1], [], []>} : vector<8x8xf32>, vector<8x16xf32>, vector<8x16xf32> -> vector<8x16xf32>
    %97 = vector.extract_strided_slice %31 {offsets = [0, 48], sizes = [8, 16], strides = [1, 1]} : vector<8x64xf32> to vector<8x16xf32>
    %98 = vector.extract_strided_slice %32 {offsets = [0, 48], sizes = [8, 16], strides = [1, 1]} : vector<8x64xf32> to vector<8x16xf32>
    %99 = vector.extract_strided_slice %33 {offsets = [0, 48], sizes = [8, 16], strides = [1, 1]} : vector<8x64xf32> to vector<8x16xf32>
    %100 = tpu.transpose %98, [1, 0] : vector<8x16xf32> -> vector<16x8xf32>
    %cst_33 = arith.constant dense<0.000000e+00> : vector<8x8xf32>
    %101 = tpu.matmul %97, %100, %cst_33 {dimension_numbers = #tpu.dot_dimension_numbers<[1], [0], [0], [1], [0, 0, 1, 1], [], []>} : vector<8x16xf32>, vector<16x8xf32>, vector<8x8xf32> -> vector<8x8xf32>
    %cst_34 = arith.constant 2.500000e-01 : f32
    %102 = vector.broadcast %cst_34 : f32 to vector<8x8xf32>
    %103 = arith.mulf %101, %102 : vector<8x8xf32>
    %cst_35 = arith.constant 0xFF800000 : f32
    %104 = vector.broadcast %cst_35 : f32 to vector<8x8xf32>
    %105 = arith.select %36, %104, %103 : vector<8x8xi1>, vector<8x8xf32>
    %cst_36 = arith.constant dense<0xFF800000> : vector<8xf32>
    %106 = vector.multi_reduction <maximumf>, %105, %cst_36 [1] : vector<8x8xf32> to vector<8xf32>
    %107 = vector.shape_cast %106 : vector<8xf32> to vector<8x1xf32>
    %108 = vector.broadcast %107 : vector<8x1xf32> to vector<8x8xf32>
    %109 = arith.subf %105, %108 : vector<8x8xf32>
    %110 = math.exp %109 : vector<8x8xf32>
    %cst_37 = arith.constant dense<0.000000e+00> : vector<8xf32>
    %111 = vector.multi_reduction <add>, %110, %cst_37 [1] : vector<8x8xf32> to vector<8xf32>
    %112 = vector.shape_cast %111 : vector<8xf32> to vector<8x1xf32>
    %113 = tpu.reciprocal %112 {approx = true} : vector<8x1xf32> -> vector<8x1xf32>
    %114 = vector.broadcast %113 : vector<8x1xf32> to vector<8x8xf32>
    %115 = arith.mulf %110, %114 : vector<8x8xf32>
    %cst_38 = arith.constant dense<0.000000e+00> : vector<8x16xf32>
    %116 = tpu.matmul %115, %99, %cst_38 {dimension_numbers = #tpu.dot_dimension_numbers<[1], [0], [0], [1], [0, 0, 1, 1], [], []>} : vector<8x8xf32>, vector<8x16xf32>, vector<8x16xf32> -> vector<8x16xf32>
    %117 = tpu.concatenate %56, %76, %96, %116 in 1 : vector<8x16xf32>, vector<8x16xf32>, vector<8x16xf32>, vector<8x16xf32> -> vector<8x64xf32>
    %c0_39 = arith.constant 0 : index
    %c0_40 = arith.constant 0 : index
    %118 = vector.load %arg6[%c0_39, %c0_40] : memref<64x64xf32, #tpu.memory_space<vmem>>, vector<64x64xf32>
    %cst_41 = arith.constant dense<0.000000e+00> : vector<8x64xf32>
    %119 = tpu.matmul %117, %118, %cst_41 {dimension_numbers = #tpu.dot_dimension_numbers<[1], [0], [0], [1], [0, 0, 1, 1], [], []>} : vector<8x64xf32>, vector<64x64xf32>, vector<8x64xf32> -> vector<8x64xf32>
    %c0_42 = arith.constant 0 : index
    %c0_43 = arith.constant 0 : index
    %120 = vector.load %arg7[%c0_42, %c0_43] : memref<1x64xf32, #tpu.memory_space<vmem>>, vector<1x64xf32>
    %121 = vector.broadcast %120 : vector<1x64xf32> to vector<8x64xf32>
    %122 = arith.addf %119, %121 : vector<8x64xf32>
    %123 = arith.addf %1, %122 : vector<8x64xf32>
    %cst_44 = arith.constant dense<0.000000e+00> : vector<8xf32>
    %124 = vector.multi_reduction <add>, %123, %cst_44 [1] : vector<8x64xf32> to vector<8xf32>
    %125 = vector.shape_cast %124 : vector<8xf32> to vector<8x1xf32>
    %cst_45 = arith.constant 6.400000e+01 : f32
    %126 = vector.broadcast %cst_45 : f32 to vector<8x1xf32>
    %127 = arith.divf %125, %126 : vector<8x1xf32>
    %128 = vector.broadcast %127 : vector<8x1xf32> to vector<8x64xf32>
    %129 = arith.subf %123, %128 : vector<8x64xf32>
    %130 = arith.mulf %129, %129 : vector<8x64xf32>
    %cst_46 = arith.constant dense<0.000000e+00> : vector<8xf32>
    %131 = vector.multi_reduction <add>, %130, %cst_46 [1] : vector<8x64xf32> to vector<8xf32>
    %132 = vector.shape_cast %131 : vector<8xf32> to vector<8x1xf32>
    %cst_47 = arith.constant 6.400000e+01 : f32
    %133 = vector.broadcast %cst_47 : f32 to vector<8x1xf32>
    %134 = arith.divf %132, %133 : vector<8x1xf32>
    %135 = vector.broadcast %127 : vector<8x1xf32> to vector<8x64xf32>
    %136 = arith.subf %123, %135 : vector<8x64xf32>
    %cst_48 = arith.constant 9.99999974E-6 : f32
    %137 = vector.broadcast %cst_48 : f32 to vector<8x1xf32>
    %138 = arith.addf %134, %137 : vector<8x1xf32>
    %139 = math.rsqrt %138 : vector<8x1xf32>
    %140 = vector.broadcast %139 : vector<8x1xf32> to vector<8x64xf32>
    %141 = arith.mulf %136, %140 : vector<8x64xf32>
    %c0_49 = arith.constant 0 : index
    %c0_50 = arith.constant 0 : index
    %142 = vector.load %arg8[%c0_49, %c0_50] : memref<1x64xf32, #tpu.memory_space<vmem>>, vector<1x64xf32>
    %143 = vector.broadcast %142 : vector<1x64xf32> to vector<8x64xf32>
    %144 = arith.mulf %143, %141 : vector<8x64xf32>
    %c0_51 = arith.constant 0 : index
    %c0_52 = arith.constant 0 : index
    %145 = vector.load %arg9[%c0_51, %c0_52] : memref<1x64xf32, #tpu.memory_space<vmem>>, vector<1x64xf32>
    %146 = vector.broadcast %145 : vector<1x64xf32> to vector<8x64xf32>
    %147 = arith.addf %144, %146 : vector<8x64xf32>
    %c0_53 = arith.constant 0 : index
    %c0_54 = arith.constant 0 : index
    %148 = vector.load %arg10[%c0_53, %c0_54] : memref<64x256xf32, #tpu.memory_space<vmem>>, vector<64x256xf32>
    %cst_55 = arith.constant dense<0.000000e+00> : vector<8x256xf32>
    %149 = tpu.matmul %147, %148, %cst_55 {dimension_numbers = #tpu.dot_dimension_numbers<[1], [0], [0], [1], [0, 0, 1, 1], [], []>} : vector<8x64xf32>, vector<64x256xf32>, vector<8x256xf32> -> vector<8x256xf32>
    %c0_56 = arith.constant 0 : index
    %c0_57 = arith.constant 0 : index
    %150 = vector.load %arg11[%c0_56, %c0_57] : memref<1x256xf32, #tpu.memory_space<vmem>>, vector<1x256xf32>
    %151 = vector.broadcast %150 : vector<1x256xf32> to vector<8x256xf32>
    %152 = arith.addf %149, %151 : vector<8x256xf32>
    %cst_58 = arith.constant 5.000000e-01 : f32
    %153 = vector.broadcast %cst_58 : f32 to vector<8x256xf32>
    %154 = arith.mulf %153, %152 : vector<8x256xf32>
    %155 = arith.mulf %152, %152 : vector<8x256xf32>
    %156 = arith.mulf %152, %155 : vector<8x256xf32>
    %cst_59 = arith.constant 4.471500e-02 : f32
    %157 = vector.broadcast %cst_59 : f32 to vector<8x256xf32>
    %158 = arith.mulf %157, %156 : vector<8x256xf32>
    %159 = arith.addf %152, %158 : vector<8x256xf32>
    %cst_60 = arith.constant 0.797884583 : f32
    %160 = vector.broadcast %cst_60 : f32 to vector<8x256xf32>
    %161 = arith.mulf %160, %159 : vector<8x256xf32>
    %162 = math.tanh %161 : vector<8x256xf32>
    %cst_61 = arith.constant 1.000000e+00 : f32
    %163 = vector.broadcast %cst_61 : f32 to vector<8x256xf32>
    %164 = arith.addf %163, %162 : vector<8x256xf32>
    %165 = arith.mulf %154, %164 : vector<8x256xf32>
    %c0_62 = arith.constant 0 : index
    %c0_63 = arith.constant 0 : index
    %166 = vector.load %arg12[%c0_62, %c0_63] : memref<256x64xf32, #tpu.memory_space<vmem>>, vector<256x64xf32>
    %cst_64 = arith.constant dense<0.000000e+00> : vector<8x64xf32>
    %167 = tpu.matmul %165, %166, %cst_64 {dimension_numbers = #tpu.dot_dimension_numbers<[1], [0], [0], [1], [0, 0, 1, 1], [], []>} : vector<8x256xf32>, vector<256x64xf32>, vector<8x64xf32> -> vector<8x64xf32>
    %c0_65 = arith.constant 0 : index
    %c0_66 = arith.constant 0 : index
    %168 = vector.load %arg13[%c0_65, %c0_66] : memref<1x64xf32, #tpu.memory_space<vmem>>, vector<1x64xf32>
    %169 = vector.broadcast %168 : vector<1x64xf32> to vector<8x64xf32>
    %170 = arith.addf %167, %169 : vector<8x64xf32>
    %171 = arith.addf %123, %170 : vector<8x64xf32>
    %c0_67 = arith.constant 0 : index
    %c0_68 = arith.constant 0 : index
    %c0_69 = arith.constant 0 : index
    %172 = vector.load %arg14[%c0_67, %c0_68, %c0_69] : memref<1x8x64xf32, #tpu.memory_space<vmem>>, vector<1x8x64xf32>
    %173 = vector.shape_cast %172 : vector<1x8x64xf32> to vector<8x64xf32>
    %174 = vector.shape_cast %171 : vector<8x64xf32> to vector<1x8x64xf32>
    tpu.vector_store %arg14[%c0_67, %c0_68, %c0_69], %174 {strides = array<i32>} : memref<1x8x64xf32, #tpu.memory_space<vmem>>, vector<1x8x64xf32>,
    return
  }
  func.func @transform_0(%arg0: i32) -> (i32, i32, i32) {
    %c0_i32 = arith.constant 0 : i32
    %c0_i32_0 = arith.constant 0 : i32
    %c0_i32_1 = arith.constant 0 : i32
    return %arg0, %c0_i32, %c0_i32_0 : i32, i32, i32
  }
  func.func @transform_1(%arg0: i32) -> (i32, i32) {
    %c0_i32 = arith.constant 0 : i32
    %c0_i32_0 = arith.constant 0 : i32
    %c0_i32_1 = arith.constant 0 : i32
    return %c0_i32, %c0_i32_0 : i32, i32
  }
  func.func @transform_2(%arg0: i32) -> (i32, i32) {
    %c0_i32 = arith.constant 0 : i32
    %c0_i32_0 = arith.constant 0 : i32
    %c0_i32_1 = arith.constant 0 : i32
    return %c0_i32, %c0_i32_0 : i32, i32
  }
  func.func @transform_3(%arg0: i32) -> (i32, i32) {
    %c0_i32 = arith.constant 0 : i32
    %c0_i32_0 = arith.constant 0 : i32
    %c0_i32_1 = arith.constant 0 : i32
    return %c0_i32, %c0_i32_0 : i32, i32
  }
  func.func @transform_4(%arg0: i32) -> (i32, i32) {
    %c0_i32 = arith.constant 0 : i32
    %c0_i32_0 = arith.constant 0 : i32
    %c0_i32_1 = arith.constant 0 : i32
    return %c0_i32, %c0_i32_0 : i32, i32
  }
  func.func @transform_5(%arg0: i32) -> (i32, i32) {
    %c0_i32 = arith.constant 0 : i32
    %c0_i32_0 = arith.constant 0 : i32
    %c0_i32_1 = arith.constant 0 : i32
    return %c0_i32, %c0_i32_0 : i32, i32
  }
  func.func @transform_6(%arg0: i32) -> (i32, i32) {
    %c0_i32 = arith.constant 0 : i32
    %c0_i32_0 = arith.constant 0 : i32
    %c0_i32_1 = arith.constant 0 : i32
    return %c0_i32, %c0_i32_0 : i32, i32
  }
  func.func @transform_7(%arg0: i32) -> (i32, i32) {
    %c0_i32 = arith.constant 0 : i32
    %c0_i32_0 = arith.constant 0 : i32
    %c0_i32_1 = arith.constant 0 : i32
    return %c0_i32, %c0_i32_0 : i32, i32
  }
  func.func @transform_8(%arg0: i32) -> (i32, i32) {
    %c0_i32 = arith.constant 0 : i32
    %c0_i32_0 = arith.constant 0 : i32
    %c0_i32_1 = arith.constant 0 : i32
    return %c0_i32, %c0_i32_0 : i32, i32
  }
  func.func @transform_9(%arg0: i32) -> (i32, i32) {
    %c0_i32 = arith.constant 0 : i32
    %c0_i32_0 = arith.constant 0 : i32
    %c0_i32_1 = arith.constant 0 : i32
    return %c0_i32, %c0_i32_0 : i32, i32
  }
  func.func @transform_10(%arg0: i32) -> (i32, i32) {
    %c0_i32 = arith.constant 0 : i32
    %c0_i32_0 = arith.constant 0 : i32
    %c0_i32_1 = arith.constant 0 : i32
    return %c0_i32, %c0_i32_0 : i32, i32
  }
  func.func @transform_11(%arg0: i32) -> (i32, i32) {
    %c0_i32 = arith.constant 0 : i32
    %c0_i32_0 = arith.constant 0 : i32
    %c0_i32_1 = arith.constant 0 : i32
    return %c0_i32, %c0_i32_0 : i32, i32
  }
  func.func @transform_12(%arg0: i32) -> (i32, i32) {
    %c0_i32 = arith.constant 0 : i32
    %c0_i32_0 = arith.constant 0 : i32
    %c0_i32_1 = arith.constant 0 : i32
    return %c0_i32, %c0_i32_0 : i32, i32
  }
  func.func @transform_13(%arg0: i32) -> (i32, i32, i32) {
    %c0_i32 = arith.constant 0 : i32
    %c0_i32_0 = arith.constant 0 : i32
    %c0_i32_1 = arith.constant 0 : i32
    return %arg0, %c0_i32, %c0_i32_0 : i32, i32, i32
  }
}

module attributes {stable_mosaic.version = 11 : i64} {
  func.func @_final_norm_head_kernel(%arg0: i32, %arg1: i32, %arg2: memref<8x64xf32, #tpu.memory_space<vmem>>, %arg3: memref<1x64xf32, #tpu.memory_space<vmem>>, %arg4: memref<1x64xf32, #tpu.memory_space<vmem>>, %arg5: memref<64x128xf32, #tpu.memory_space<vmem>>, %arg6: memref<8x128xf32, #tpu.memory_space<vmem>>) attributes {dimension_semantics = [#tpu.dimension_semantics<parallel>, #tpu.dimension_semantics<parallel>], iteration_bounds = array<i64: 2, 1>, scalar_prefetch = 0 : i64, scratch_operands = 0 : i64, tpu.core_type = #tpu.core_type<tc>, window_params = [{transform_indices = @transform_0, window_bounds = array<i64: 8, 64>}, {pipeline_mode = #tpu.pipeline_mode<synchronous>, transform_indices = @transform_1, window_bounds = array<i64: 1, 64>}, {pipeline_mode = #tpu.pipeline_mode<synchronous>, transform_indices = @transform_2, window_bounds = array<i64: 1, 64>}, {transform_indices = @transform_3, window_bounds = array<i64: 64, 128>}, {transform_indices = @transform_4, window_bounds = array<i64: 8, 128>}]} {
    %c0 = arith.constant 0 : index
    %c0_0 = arith.constant 0 : index
    %0 = vector.load %arg2[%c0, %c0_0] : memref<8x64xf32, #tpu.memory_space<vmem>>, vector<8x64xf32>
    %cst = arith.constant dense<0.000000e+00> : vector<8xf32>
    %1 = vector.multi_reduction <add>, %0, %cst [1] : vector<8x64xf32> to vector<8xf32>
    %2 = vector.shape_cast %1 : vector<8xf32> to vector<8x1xf32>
    %cst_1 = arith.constant 6.400000e+01 : f32
    %3 = vector.broadcast %cst_1 : f32 to vector<8x1xf32>
    %4 = arith.divf %2, %3 : vector<8x1xf32>
    %5 = vector.broadcast %4 : vector<8x1xf32> to vector<8x64xf32>
    %6 = arith.subf %0, %5 : vector<8x64xf32>
    %7 = arith.mulf %6, %6 : vector<8x64xf32>
    %cst_2 = arith.constant dense<0.000000e+00> : vector<8xf32>
    %8 = vector.multi_reduction <add>, %7, %cst_2 [1] : vector<8x64xf32> to vector<8xf32>
    %9 = vector.shape_cast %8 : vector<8xf32> to vector<8x1xf32>
    %cst_3 = arith.constant 6.400000e+01 : f32
    %10 = vector.broadcast %cst_3 : f32 to vector<8x1xf32>
    %11 = arith.divf %9, %10 : vector<8x1xf32>
    %12 = vector.broadcast %4 : vector<8x1xf32> to vector<8x64xf32>
    %13 = arith.subf %0, %12 : vector<8x64xf32>
    %cst_4 = arith.constant 9.99999974E-6 : f32
    %14 = vector.broadcast %cst_4 : f32 to vector<8x1xf32>
    %15 = arith.addf %11, %14 : vector<8x1xf32>
    %16 = math.rsqrt %15 : vector<8x1xf32>
    %17 = vector.broadcast %16 : vector<8x1xf32> to vector<8x64xf32>
    %18 = arith.mulf %13, %17 : vector<8x64xf32>
    %c0_5 = arith.constant 0 : index
    %c0_6 = arith.constant 0 : index
    %19 = vector.load %arg3[%c0_5, %c0_6] : memref<1x64xf32, #tpu.memory_space<vmem>>, vector<1x64xf32>
    %20 = vector.broadcast %19 : vector<1x64xf32> to vector<8x64xf32>
    %21 = arith.mulf %20, %18 : vector<8x64xf32>
    %c0_7 = arith.constant 0 : index
    %c0_8 = arith.constant 0 : index
    %22 = vector.load %arg4[%c0_7, %c0_8] : memref<1x64xf32, #tpu.memory_space<vmem>>, vector<1x64xf32>
    %23 = vector.broadcast %22 : vector<1x64xf32> to vector<8x64xf32>
    %24 = arith.addf %21, %23 : vector<8x64xf32>
    %c0_9 = arith.constant 0 : index
    %c0_10 = arith.constant 0 : index
    %25 = vector.load %arg5[%c0_9, %c0_10] : memref<64x128xf32, #tpu.memory_space<vmem>>, vector<64x128xf32>
    %cst_11 = arith.constant dense<0.000000e+00> : vector<8x128xf32>
    %26 = tpu.matmul %24, %25, %cst_11 {dimension_numbers = #tpu.dot_dimension_numbers<[1], [0], [0], [1], [0, 0, 1, 1], [], []>} : vector<8x64xf32>, vector<64x128xf32>, vector<8x128xf32> -> vector<8x128xf32>
    %c0_12 = arith.constant 0 : index
    %c0_13 = arith.constant 0 : index
    %27 = vector.load %arg6[%c0_12, %c0_13] : memref<8x128xf32, #tpu.memory_space<vmem>>, vector<8x128xf32>
    tpu.vector_store %arg6[%c0_12, %c0_13], %26 {strides = array<i32>} : memref<8x128xf32, #tpu.memory_space<vmem>>, vector<8x128xf32>,
    return
  }
  func.func @transform_0(%arg0: i32, %arg1: i32) -> (i32, i32) {
    %c0_i32 = arith.constant 0 : i32
    %c0_i32_0 = arith.constant 0 : i32
    return %arg0, %c0_i32 : i32, i32
  }
  func.func @transform_1(%arg0: i32, %arg1: i32) -> (i32, i32) {
    %c0_i32 = arith.constant 0 : i32
    %c0_i32_0 = arith.constant 0 : i32
    %c0_i32_1 = arith.constant 0 : i32
    return %c0_i32, %c0_i32_0 : i32, i32
  }
  func.func @transform_2(%arg0: i32, %arg1: i32) -> (i32, i32) {
    %c0_i32 = arith.constant 0 : i32
    %c0_i32_0 = arith.constant 0 : i32
    %c0_i32_1 = arith.constant 0 : i32
    return %c0_i32, %c0_i32_0 : i32, i32
  }
  func.func @transform_3(%arg0: i32, %arg1: i32) -> (i32, i32) {
    %c0_i32 = arith.constant 0 : i32
    %c0_i32_0 = arith.constant 0 : i32
    return %c0_i32, %arg1 : i32, i32
  }
  func.func @transform_4(%arg0: i32, %arg1: i32) -> (i32, i32) {
    %c0_i32 = arith.constant 0 : i32
    return %arg0, %arg1 : i32, i32
  }
}

</mosaic_0001>

<bundles_post_ra>
// kernel: _lambda_.5
= control target key start
LH: loop header
LB: loop body
LE: loop exit
PB: predicated region body
PF: predicated region fallthrough
CT: control target
= control target key end

     0   :  { %9 = vsyncpa [#allocation3], 0  ;;  %s708_s0 = inlined_call_operand.vmem [shape: f32[16,64], index: 0, kind: input, shape index: {}]   ;;  %s709_s1 = inlined_call_operand.vmem [shape: f32[1,64], index: 1, kind: input, shape index: {}]   ;;  %s710_s2 = inlined_call_operand.vmem [shape: f32[1,64], index: 2, kind: input, shape index: {}]   ;;  %s711_s3 = inlined_call_operand.vmem [shape: f32[64,128], index: 3, kind: input, shape index: {}]   ;;  %s712_s4 = inlined_call_operand.hbm [shape: f32[16,128], index: 4, kind: output, shape index: {}]  }
   0x1   :  { %11 = vsyncpa [#allocation3 + $0x1], 0  ;;  %s578_s15 = smov 0   ;;  %s580_s16 = smov 0  }
   0x2   :  { %s582_s17 = smov 0   ;;  %s584_s18 = smov 0  }
   0x3   :  { %s586_s19 = smov 0   ;;  %s588_s20 = smov 0  }
   0x4 LB: > { %s397_s21 = sadd.s32 4294967295, %s550_s20   ;;  %s398_s22 = sadd.s32 4294967294, %s550_s20   ;;  %s550_s20 = sphi %s588_s20, %s17_s20   ;;  %s546_s19 = sphi %s586_s19, %s719_s19   ;;  %s542_s18 = sphi %s584_s18, %s718_s18   ;;  %s538_s17 = sphi %s582_s17, %s717_s17   ;;  %s534_s16 = sphi %s580_s16, %s716_s16   ;;  %s530_s15 = sphi %s578_s15, %s715_s15  }
   0x5   : > { %s29_s23 = sadd.s32 1, %s546_s19  ;;  %s132_s24 = sadd.s32 1, %s538_s17 }
   0x6   : > { %p31_p0 = scmp.ge.s32.totalorder %s29_s23, 2  ;;  %p142_p1 = scmp.ne.s32.totalorder %s538_s17, %s534_s16 }
   0x7   : > { %p143_p2 = scmp.eq.s32.totalorder %s397_s21, 1  ;;  %p148_p3 = scmp.ne.s32.totalorder %s534_s16, %s530_s15 }
   0x8   : > { %s721_s23 = smov (%p31_p0, %s29_s23), 0  ;;  %p149_p5 = scmp.eq.s32.totalorder %s398_s22, 1 }
   0x9   : > { %p618_p4 = por %p143_p2, %p142_p1  ;;  %s127_s26 = ssub.s32 %s546_s19, %s721_s23 }
   0xa   : > { %p402_p6 = scmp.ge.s32.totalorder %s550_s20, 1  ;;  %p130_p7 = scmp.eq.s32.totalorder %s127_s26, 0 }
   0xb   : > { %p625_p8 = por %p149_p5, %p148_p3  ;;  %p187_p9 = scmp.lt.s32.totalorder %s550_s20, 3 }
   0xc   : > { %s631_s28 = scalar_select %p130_p7, %s538_s17, %s132_s24  }
   0xd   : > { %p188_p10 = pnand %p402_p6, %p187_p9 }
   0xe   : > { %p216_p11 = scmp.lt.s32.totalorder (!%p188_p10), %s542_s18, 1  ;;  %s213_s12 = sand.u32 (!%p188_p10), 1, %s534_s16  }
   0xf   : > { %191 = sbr.rel (%p188_p10) target bundleno = 422 (0x1a6), region = 36  ;;  %s403_s13 = sshll.u32 (!%p188_p10), %s213_s12, 3 }
  0x10   : > { %s407_s14 = sshll.u32 (!%p188_p10), %s542_s18, 3  ;;  %s215_s26 = scalar_lea.vmem (!%p188_p10), [#allocation2], %s403_s13 }
  0x11   : > { %s309_s24 = scalar_lea.hbm (!%p188_p10), %s712_s4, %s407_s14  ;;  %s298_s5 = scalar_lea.sflag (!%p188_p10), [#allocation3], %s213_s12 }
  0x12   : > { %s492_s9 = scalar_lea.hbm (!%p188_p10), %s712_s4, 16 }
  0x14   : > { %s217_s29 = scalar_select %p216_p11, %s542_s18, 1  ;;  %vm225_vm0 = vcmask 523264   ;;  %v552_v2 = vmov 64.0   ;;  %v272_v14 = vld [vmem:[%s711_s3 + $0x38] sm:$0xff]  ;;  %v271_v15 = vld [vmem:[%s711_s3 + $0x30] sm:$0xff]  ;;  %v270_v16 = vld [vmem:[%s711_s3 + $0x28] sm:$0xff] }
  0x15   : > { %468 = vrcp.f32 %v552_v2  ;;  %284 = vmatpush.msra.mxu0 %v272_v14  ;;  %v269_v17 = vld [vmem:[%s711_s3 + $0x20] sm:$0xff]  ;;  %v268_v18 = vld [vmem:[%s711_s3 + $0x18] sm:$0xff]  ;;  %v267_v19 = vld [vmem:[%s711_s3 + $0x10] sm:$0xff] }
  0x16   : > { %s404_s30 = sshll.u32 %s217_s29, 3  ;;  %v266_v20 = vld [vmem:[%s711_s3 + $0x8] sm:$0xff]  ;;  %v265_v21 = vld [vmem:[%s711_s3] sm:$0xff]  ;;  %s311_s29 = sshll.u32 %s215_s26, 4  ;;  %s312_s29 = int_to_ptr.vmem [resolvable:$true] %s311_s29 }
  0x17   : > { %s219_s7 = scalar_lea.vmem %s708_s0, %s404_s30  ;;  %285 = vmatpush.msra.mxu0 %v271_v15  ;;  %v466_v31 = vld [vmem:[%s709_s1] ss:$0 sm:$0xff]  ;;  %s313_s30 = sshll.u32 %s309_s24, 4  ;;  %s314_s30 = int_to_ptr.hbm [resolvable:$true] %s313_s30 }
  0x18   : > { %v224_v0 = vld [vmem:[%s219_s7] sm:$0xff]  ;;  %s486_s6 = sshra.s32 %s314_s30, 4  ;;  %s487_s6 = int_to_ptr.hbm [resolvable:$true] %s486_s6 }
  0x19   : > { %v226_v1 = vsel %vm225_vm0, %v224_v0, 0.0  ;;  %286 = vmatpush.msra.mxu0 %v270_v16  ;;  %v467_v34 = vld [vmem:[%s710_s2] ss:$0 sm:$0xff]  ;;  %s488_s7 = scalar_lea.hbm %s487_s6, 8  ;;  %p493_p1 = scmp.lt.s32.totalorder %s487_s6, %s712_s4 }
  0x1a   : > { %227 = vadd.xlane.f32.xlu0 %v226_v1  ;;  %p489_p12 = scmp.ne.s32.totalorder %s487_s6, %s488_s7  ;;  %p494_p2 = scmp.lt.s32.totalorder %s492_s9, %s488_s7 }
  0x1b   : > { %v469_v3 = vpop.eup %468  ;;  %287 = vmatpush.msra.mxu0 %v269_v17 }
  0x1c   : > { %v230_v4 = vmul.f32 64.0, %v469_v3  ;;  %vm234_vm1 = vweird.f32 %v469_v3  ;;  %p490_p13 = pnand %p489_p12, %p618_p4  ;;  %p495_p3 = por %p494_p2, %p493_p1 }
  0x1d   : > { %288 = vmatpush.msra.mxu0 %v268_v18 }
  0x1e   : > { %v231_v5 = vsub.f32 1.0, %v230_v4  ;;  %p491_p0 = pneg %p490_p13 }
  0x1f   : > { %289 = vmatpush.msra.mxu0 %v267_v19 }
  0x20   : > { %v232_v6 = vmul.f32 %v469_v3, %v231_v5  ;;  %p496_p5 = pnand %p495_p3, %p491_p0 }
  0x21   : > { %290 = vmatpush.msra.mxu0 %v266_v20 }
  0x22   : > { %v233_v7 = vadd.f32 %v469_v3, %v232_v6 }
  0x23   : > { %291 = vmatpush.msra.mxu0 %v265_v21 }
  0x24   : > { %v235_v8 = vsel %vm234_vm1, %v469_v3, %v233_v7 }
  0x8d   : > { %v228_v9 = vpop.xlane.xlu0 %227 }
  0x8e   : > { %v236_v10 = vmul.f32 %v235_v8, %v228_v9 }
  0x90   : > { %v237_v11 = vsub.f32 %v224_v0, %v236_v10 }
  0x92   : > { %v238_v12 = vmul.f32 %v237_v11, %v237_v11 }
  0x94   : > { %v239_v13 = vsel %vm225_vm0, %v238_v12, 0.0 }
  0x95   : > { %240 = vadd.xlane.f32.xlu0 %v239_v13 }
 0x108   : > { %v241_v22 = vpop.xlane.xlu0 %240 }
 0x109   : > { %v242_v23 = vmul.f32 %v241_v22, %v235_v8 }
 0x10b   : > { %v243_v24 = vadd.f32 1e-05, %v242_v23 }
 0x10d   : > { %470 = vrsqrt.f32 %v243_v24  ;;  %vm250_vm3 = vweird.f32 %v243_v24 }
 0x113   : > { %v471_v25 = vpop.eup %470 }
 0x114   : > { %v245_v26 = vmul.f32 %v471_v25, %v243_v24  ;;  %vm251_vm2 = vweird.f32 %v471_v25 }
 0x115   : > { %vm252_vm4 = vmor %vm250_vm3, %vm251_vm2 }
 0x116   : > { %v246_v27 = vmul.f32 %v471_v25, %v245_v26 }
 0x118   : > { %v247_v28 = vmul.f32 0.5, %v246_v27 }
 0x11a   : > { %v248_v29 = vsub.f32 1.5, %v247_v28 }
 0x11c   : > { %v249_v30 = vmul.f32 %v471_v25, %v248_v29 }
 0x11e   : > { %v253_v32 = vsel %vm252_vm4, %v471_v25, %v249_v30 }
 0x11f   : > { %v254_v33 = vmul.f32 %v253_v32, %v237_v11 }
 0x121   : > { %v259_v35 = vmul.f32 %v466_v31, %v254_v33 }
 0x123   : > { %v264_v36 = vadd.f32 %v467_v34, %v259_v35 }
 0x125   : > { %405 = vmatmul.msk.f32.vlgmr.msra.gmra.mxu0 %vm225_vm0, %v264_v36 }
 0x1a2   : > { %v293_v37 = vpop.f32.mrf.mxu0 }
 0x1a3   : > { %296 = vst [vmem:[%s215_s26] sm:$0xff] %v293_v37 }
 0x1a4   : > { %499 = shalt.err (!%p496_p5)
}
 0x1a5   : > { %410 = dma.vmem_to_hbm [thread:$0]  (%p618_p4), %s312_s29, 128, %s314_s30, %s298_s5  }
 0x1a6 PF: > { %p416_p6 = scmp.ge.s32.totalorder %s550_s20, 2  ;;  %s325_s12 = sand.u32 1, %s530_s15  }
 0x1a7   : > { %s326_s13 = scalar_lea.sflag [#allocation3], %s325_s12 }
 0x1a8   : > { %p413_p7 = pnand %p416_p6, %p625_p8 }
 0x1aa   : > { %p414_p9 = pneg %p413_p7 }
 0x1ac   : > { %525 = dma.done.wait (%p414_p9), %s326_s13, 128  }
 0x1ad   : > { %527 = vsyncadd (%p414_p9), %s326_s13, 4294967168  ;;  %s17_s20 = sadd.s32 1, %s550_s20   ;;  %s715_s15 = smov %s534_s16 }
 0x1ae   : > { %p14_p10 = scmp.ge.s32.totalorder %s17_s20, 4   ;;  %s716_s16 = smov %s538_s17 }
 0x1af   : > { %s717_s17 = smov %s631_s28  ;;  %s718_s18 = smov %s546_s19 }
 0x1b0   : > { %s719_s19 = smov %s721_s23  ;;  %16 = sbr.rel (!%p14_p10) target bundleno = 4 (0x4), region = 74 }
 0x1b5   :  { %332 = vsyncpa [#allocation3], 1 }
 0x1b6   :  { %334 = vsyncpa [#allocation3 + $0x1], 1 }

// kernel: _lambda_.3
= control target key start
LH: loop header
LB: loop body
LE: loop exit
PB: predicated region body
PF: predicated region fallthrough
CT: control target
= control target key end

     0   :  { %s1273_s25 = smov 0   ;;  %s1609_s0 = inlined_call_operand.vmem [shape: f32[2,8,64], index: 0, kind: input, shape index: {}]   ;;  %s1610_s1 = inlined_call_operand.vmem [shape: f32[1,64], index: 1, kind: input, shape index: {}]   ;;  %s1611_s2 = inlined_call_operand.vmem [shape: f32[1,64], index: 2, kind: input, shape index: {}]   ;;  %s1612_s3 = inlined_call_operand.vmem [shape: f32[64,192], index: 3, kind: input, shape index: {}]   ;;  %s1613_s4 = inlined_call_operand.vmem [shape: f32[1,192], index: 4, kind: input, shape index: {}]   ;;  %s1614_s5 = inlined_call_operand.vmem [shape: f32[64,64], index: 5, kind: input, shape index: {}]   ;;  %s1615_s6 = inlined_call_operand.vmem [shape: f32[1,64], index: 6, kind: input, shape index: {}]   ;;  %s1616_s7 = inlined_call_operand.vmem [shape: f32[1,64], index: 7, kind: input, shape index: {}]   ;;  %s1617_s8 = inlined_call_operand.vmem [shape: f32[1,64], index: 8, kind: input, shape index: {}]   ;;  %s1618_s9 = inlined_call_operand.vmem [shape: f32[64,256], index: 9, kind: input, shape index: {}]   ;;  %s1619_s10 = inlined_call_operand.vmem [shape: f32[1,256], index: 10, kind: input, shape index: {}]   ;;  %s1620_s11 = inlined_call_operand.vmem [shape: f32[256,64], index: 11, kind: input, shape index: {}]   ;;  %s1621_s12 = inlined_call_operand.vmem [shape: f32[1,64], index: 12, kind: input, shape index: {}]   ;;  %s1622_s13 = inlined_call_operand.vmem [shape: f32[2,8,64], index: 13, kind: output, shape index: {}]  }
   0x1 LB: > { %s1113_s26 = sadd.s32 4294967295, %s1193_s25   ;;  %p1117_p0 = scmp.ge.s32.totalorder %s1193_s25, 1  ;;  %s1193_s25 = sphi %s1273_s25, %s23_s25  }
   0x2   : > { %p386_p1 = scmp.lt.s32.totalorder %s1193_s25, 3 }
   0x4   : > { %p387_p2 = pnand %p1117_p0, %p386_p1 }
   0x5   : > { %p428_p3 = scmp.lt.s32.totalorder (!%p387_p2), %s1113_s26, 1  ;;  %s1196_s24 = smov (!%p387_p2), 112  }
   0x6   : > { %390 = sbr.rel (%p387_p2) target bundleno = 2289 (0x8f1), region = 72  ;;  %s1197_s28 = smov (!%p387_p2), 48  }
   0x7   : > { %s1198_s29 = smov (!%p387_p2), 64   ;;  %s1200_s14 = smov (!%p387_p2), 32  }
   0x8   : > { %s1201_s15 = smov (!%p387_p2), 80   ;;  %s1202_s16 = smov (!%p387_p2), 16  }
   0xb   : > { %s1624_s26 = smov (!%p428_p3, %s1113_s26), 1  ;;  %vm437_vm0 = vcmask 523264   ;;  %v1195_v2 = vmov 64.0   ;;  %v491_v14 = vld [vmem:[%s1612_s3 + $0x70] sm:$0xff]  ;;  %v492_v15 = vld [vmem:[%s1612_s3 + $0x78] sm:$0xff]  ;;  %v489_v16 = vld [vmem:[%s1612_s3 + $0x60] sm:$0xff]  ;;  %v542_v54 = vlaneseq }
   0xc   : > { %s1118_s27 = sshll.u32 %s1624_s26, 3  ;;  %1161 = vrcp.f32 %v1195_v2  ;;  %510 = vmatpush.msra.mxu0 %v491_v14  ;;  %530 = vmatpush.msra.mxu1 %v492_v15  ;;  %v490_v17 = vld [vmem:[%s1612_s3 + $0x68] sm:$0xff]  ;;  %v487_v18 = vld [vmem:[%s1612_s3 + $0x50] sm:$0xff]  ;;  %v488_v19 = vld [vmem:[%s1612_s3 + $0x58] sm:$0xff]  ;;  %vm550_vm5 = vcmask 130048   ;;  %vm577_vm7 = vcmask 64512  }
   0xd   : > { %s431_s30 = scalar_lea.vmem %s1609_s0, %s1118_s27  ;;  %v485_v20 = vld [vmem:[%s1612_s3 + $0x40] sm:$0xff]  ;;  %v486_v21 = vld [vmem:[%s1612_s3 + $0x48] sm:$0xff]  ;;  %v483_v22 = vld [vmem:[%s1612_s3 + $0x30] sm:$0xff]  ;;  %v543_v55 = vshrl.u32 %v542_v54, 7  ;;  %v545_v56 = vand.u32 127, %v542_v54  ;;  %vm827_vm8 = vcmask 261120  }
   0xe   : > { %v1289_v0 = vld [vmem:[%s431_s30] sm:$0xff]  ;;  %511 = vmatpush.msra.mxu0 %v489_v16  ;;  %531 = vmatpush.msra.mxu1 %v490_v17  ;;  %v484_v23 = vld [vmem:[%s1612_s3 + $0x38] sm:$0xff]  ;;  %v482_v25 = vld [vmem:[%s1612_s3 + $0x28] sm:$0xff]  ;;  %s1199_s30 = smov 96   ;;  %vm829_vm9 = vcmask 392192  }
   0xf   : > { %v438_v1 = vsel %vm437_vm0, %v1289_v0, 0.0  ;;  %v481_v24 = vld [vmem:[%s1612_s3 + $0x20] sm:$0xff]  ;;  %v479_v26 = vld [vmem:[%s1612_s3 + $0x10] sm:$0xff]  ;;  %v480_v27 = vld [vmem:[%s1612_s3 + $0x18] sm:$0xff]  ;;  %vm546_vm6 = vcmp.gt.s32.totalorder %v545_v56, %v543_v55 }
  0x10   : > { %439 = vadd.xlane.f32.xlu0 %v438_v1  ;;  %512 = vmatpush.msra.mxu0 %v487_v18  ;;  %v477_v28 = vld [vmem:[%s1612_s3] sm:$0xff]  ;;  %v478_v29 = vld [vmem:[%s1612_s3 + $0x8] sm:$0xff]  ;;  %v838_v55 = vld [vmem:[%s1614_s5 + $0x38] sm:$0xff] }
  0x11   : > { %532 = vmatpush.msra.mxu1 %v488_v19  ;;  %v1155_v39 = vld [vmem:[%s1610_s1] ss:$0 sm:$0xff]  ;;  %v837_v56 = vld [vmem:[%s1614_s5 + $0x30] sm:$0xff] }
  0x12   : > { %v1162_v3 = vpop.eup %1161  ;;  %513 = vmatpush.msra.mxu0 %v485_v20  ;;  %v1156_v42 = vld [vmem:[%s1611_s2] ss:$0 sm:$0xff] }
  0x13   : > { %v442_v4 = vmul.f32 64.0, %v1162_v3  ;;  %vm446_vm1 = vweird.f32 %v1162_v3  ;;  %533 = vmatpush.msra.mxu1 %v486_v21  ;;  %v493_v45 = vld [vmem:[%s1613_s4] sm:$0x3] }
  0x14   : > { %514 = vmatpush.msra.mxu0 %v483_v22  ;;  %v495_v46 = vperm.slane %v493_v45, 0  ;;  %v496_v47 = vperm.slane %v493_v45, 1 }
  0x15   : > { %v443_v5 = vsub.f32 1.0, %v442_v4  ;;  %534 = vmatpush.msra.mxu1 %v484_v23 }
  0x16   : > { %515 = vmatpush.msra.mxu0 %v481_v24 }
  0x17   : > { %v444_v6 = vmul.f32 %v1162_v3, %v443_v5  ;;  %535 = vmatpush.msra.mxu1 %v482_v25 }
  0x18   : > { %516 = vmatpush.msra.mxu0 %v479_v26 }
  0x19   : > { %v445_v7 = vadd.f32 %v1162_v3, %v444_v6  ;;  %536 = vmatpush.msra.mxu1 %v480_v27 }
  0x1a   : > { %517 = vmatpush.msra.mxu0 %v477_v28 }
  0x1b   : > { %v1293_v8 = vsel %vm446_vm1, %v1162_v3, %v445_v7  ;;  %537 = vmatpush.msra.mxu1 %v478_v29 }
  0x83   : > { %v440_v9 = vpop.xlane.xlu0 %439 }
  0x84   : > { %v448_v10 = vmul.f32 %v1293_v8, %v440_v9 }
  0x86   : > { %v449_v11 = vsub.f32 %v1289_v0, %v448_v10 }
  0x88   : > { %v450_v12 = vmul.f32 %v449_v11, %v449_v11 }
  0x8a   : > { %v451_v13 = vsel %vm437_vm0, %v450_v12, 0.0 }
  0x8b   : > { %452 = vadd.xlane.f32.xlu0 %v451_v13 }
  0xfe   : > { %v453_v30 = vpop.xlane.xlu0 %452 }
  0xff   : > { %v454_v31 = vmul.f32 %v453_v30, %v1293_v8 }
 0x101   : > { %v455_v32 = vadd.f32 1e-05, %v454_v31 }
 0x103   : > { %1163 = vrsqrt.f32 %v455_v32  ;;  %vm462_vm3 = vweird.f32 %v455_v32 }
 0x109   : > { %v1164_v33 = vpop.eup %1163 }
 0x10a   : > { %v457_v34 = vmul.f32 %v1164_v33, %v455_v32  ;;  %vm463_vm2 = vweird.f32 %v1164_v33 }
 0x10b   : > { %vm464_vm4 = vmor %vm462_vm3, %vm463_vm2 }
 0x10c   : > { %v458_v35 = vmul.f32 %v1164_v33, %v457_v34 }
 0x10e   : > { %v459_v36 = vmul.f32 0.5, %v458_v35 }
 0x110   : > { %v460_v37 = vsub.f32 1.5, %v459_v36 }
 0x112   : > { %v461_v38 = vmul.f32 %v1164_v33, %v460_v37 }
 0x114   : > { %v465_v40 = vsel %vm464_vm4, %v1164_v33, %v461_v38 }
 0x115   : > { %v466_v41 = vmul.f32 %v465_v40, %v449_v11 }
 0x117   : > { %v471_v43 = vmul.f32 %v1155_v39, %v466_v41 }
 0x119   : > { %v476_v44 = vadd.f32 %v1156_v42, %v471_v43 }
 0x11b   : > { %1120 = vmatmul.msk.f32.vlgmr.msra.gmra.mxu0 %vm437_vm0, %v476_v44  ;;  %1121 = vmatmul.msk.f32.vlgmr.msra.gmra.mxu1 %vm437_vm0, %v476_v44 }
 0x198   : > { %v519_v48 = vpop.f32.mrf.mxu0  ;;  %v539_v49 = vpop.f32.mrf.mxu1 }
 0x199   : > { %v520_v50 = vadd.f32 %v519_v48, %v495_v46  ;;  %v1358_v51 = vadd.f32 %v539_v49, %v496_v47 }
 0x19b   : > { %607 = vmatpush.msra.mxu3 %v1358_v51  ;;  %612 = vrot.lane.b32.xlu0 %v520_v50, %s1196_s24 }
 0x19c   : > { %614 = vrot.lane.b32.xlu2 %v520_v50, %s1197_s28  ;;  %548 = vrot.lane.b32.xlu1 %v520_v50, %s1198_s29 }
 0x1a3   : > { %680 = vrot.lane.b32.xlu0 %v520_v50, %s1199_s30 }
 0x1a4   : > { %682 = vrot.lane.b32.xlu2 %v520_v50, %s1200_s14 }
 0x1ab   : > { %747 = vrot.lane.b32.xlu0 %v520_v50, %s1201_s15 }
 0x1f6   : > { %v615_v52 = vpop.permute.xlu2 %614 }
 0x1f7   : > { %1125 = vmatpush.xpose.msk.msrb.mxu3 %vm550_vm5, %v615_v52 }
 0x1fe   : > { %v683_v4 = vpop.permute.xlu2 %682 }
 0x20d   : > { %v613_v3 = vpop.permute.xlu0 %612 }
 0x20e   : > { %v549_v53 = vpop.permute.xlu1 %548 }
 0x20f   : > { %1122 = vmatpush.xpose.msk.msra.mxu2 %vm550_vm5, %v549_v53 }
 0x212   : > { %1123 = vmatmul.msk.f32.vlgmr.msra.gmra.mxu2 %vm550_vm5, %v520_v50 }
 0x215   : > { %v681_v6 = vpop.permute.xlu0 %680 }
 0x21d   : > { %v748_v11 = vpop.permute.xlu0 %747 }
 0x295   : > { %v572_v57 = vpop.f32.mrf.mxu2 }
 0x296   : > { %v575_v58 = vmul.f32 0.25, %v572_v57  ;;  %v836_v57 = vld [vmem:[%s1614_s5 + $0x28] sm:$0xff] }
 0x298   : > { %v576_v59 = vsel %vm546_vm6, -inf, %v575_v58  ;;  %v835_v58 = vld [vmem:[%s1614_s5 + $0x20] sm:$0xff] }
 0x299   : > { %v578_v60 = vsel %vm577_vm7, %v576_v59, -inf }
 0x29a   : > { %579 = vmax.xlane.f32.xlu1 %v578_v60  ;;  %v833_v60 = vld [vmem:[%s1614_s5 + $0x10] sm:$0xff] }
 0x30d   : > { %v580_v61 = vpop.xlane.xlu1 %579 }
 0x30e   : > { %v581_v62 = vsub.f32 %v576_v59, %v580_v61  ;;  %v834_v59 = vld [vmem:[%s1614_s5 + $0x18] sm:$0xff]  ;;  %v832_v61 = vld [vmem:[%s1614_s5 + $0x8] sm:$0xff] }
 0x310   : > { %v582_v63 = vmul.f32 1.442695, %v581_v62  ;;  %v831_v62 = vld [vmem:[%s1614_s5] sm:$0xff] }
 0x312   : > { %1165 = vpow2.f32 %v582_v63 }
 0x318   : > { %v1166_v1 = vpop.eup %1165 }
 0x319   : > { %v584_v2 = vsel %vm577_vm7, %v1166_v1, 0.0 }
 0x31a   : > { %585 = vadd.xlane.f32.xlu2 %v584_v2 }
 0x332   : > { %749 = vrot.lane.b32.xlu2 %v520_v50, %s1202_s16 }
 0x38d   : > { %v586_v5 = vpop.xlane.xlu2 %585 }
 0x38e   : > { %1167 = vrcp.f32 %v586_v5 }
 0x394   : > { %v1168_v7 = vpop.eup %1167 }
 0x395   : > { %v750_v9 = vpop.permute.xlu2 %749  ;;  %v588_v10 = vmul.f32 %v1168_v7, %v1166_v1 }
 0x396   : > { %1131 = vmatpush.xpose.msk.msrb.mxu0 %vm550_vm5, %v750_v9 }
 0x397   : > { %1124 = vmatmul.msk.f32.vlgmr.msra.gmra.mxu3 %vm577_vm7, %v588_v10 }
 0x398   : > { %1128 = vmatpush.xpose.msk.msra.mxu3 %vm550_vm5, %v683_v4 }
 0x399   : > { %1132 = vmatmul.msk.f32.vlgmr.msrb.gmra.mxu0 %vm550_vm5, %v748_v11 }
 0x39f   : > { %1126 = vmatmul.msk.f32.vlgmr.msrb.gmra.mxu3 %vm550_vm5, %v613_v3 }
 0x3a7   : > { %1129 = vmatmul.msk.f32.vlgmr.msra.gmra.mxu3 %vm550_vm5, %v681_v6  ;;  %v1157_v6 = vld [vmem:[%s1615_s6] ss:$0 sm:$0xff] }
 0x416   : > { %v772_v12 = vpop.f32.mrf.mxu0 }
 0x417   : > { %v775_v13 = vmul.f32 0.25, %v772_v12 }
 0x419   : > { %v776_v14 = vsel %vm546_vm6, -inf, %v775_v13 }
 0x41a   : > { %v1380_v15 = vpop.f32.mrf.mxu3  ;;  %v777_v16 = vsel %vm577_vm7, %v776_v14, -inf }
 0x41b   : > { %778 = vmax.xlane.f32.xlu0 %v777_v16 }
 0x422   : > { %v637_v17 = vpop.f32.mrf.mxu3 }
 0x423   : > { %v640_v18 = vmul.f32 0.25, %v637_v17  ;;  %v913_v17 = vld [vmem:[%s1618_s9 + $0x70] sm:$0xff] }
 0x425   : > { %v641_v19 = vsel %vm546_vm6, -inf, %v640_v18  ;;  %v911_v18 = vld [vmem:[%s1618_s9 + $0x60] sm:$0xff] }
 0x426   : > { %v642_v20 = vsel %vm577_vm7, %v641_v19, -inf }
 0x427   : > { %643 = vmax.xlane.f32.xlu2 %v642_v20  ;;  %v909_v20 = vld [vmem:[%s1618_s9 + $0x50] sm:$0xff] }
 0x42a   : > { %v705_v21 = vpop.f32.mrf.mxu3 }
 0x42b   : > { %v708_v22 = vmul.f32 0.25, %v705_v21  ;;  %v910_v21 = vld [vmem:[%s1618_s9 + $0x58] sm:$0xff] }
 0x42d   : > { %v709_v23 = vsel %vm546_vm6, -inf, %v708_v22  ;;  %v907_v22 = vld [vmem:[%s1618_s9 + $0x40] sm:$0xff] }
 0x42e   : > { %v710_v24 = vsel %vm577_vm7, %v709_v23, -inf }
 0x42f   : > { %711 = vmax.xlane.f32.xlu1 %v710_v24  ;;  %721 = vrot.lane.b32.xlu0 %v1358_v51, %s1199_s30  ;;  %v905_v24 = vld [vmem:[%s1618_s9 + $0x30] sm:$0xff] }
 0x48e   : > { %v779_v25 = vpop.xlane.xlu0 %778 }
 0x48f   : > { %v780_v26 = vsub.f32 %v776_v14, %v779_v25  ;;  %v906_v25 = vld [vmem:[%s1618_s9 + $0x38] sm:$0xff] }
 0x491   : > { %v781_v27 = vmul.f32 1.442695, %v780_v26  ;;  %v903_v26 = vld [vmem:[%s1618_s9 + $0x20] sm:$0xff] }
 0x493   : > { %1169 = vpow2.f32 %v781_v27  ;;  %v904_v27 = vld [vmem:[%s1618_s9 + $0x28] sm:$0xff] }
 0x499   : > { %v1170_v28 = vpop.eup %1169 }
 0x49a   : > { %v644_v29 = vpop.xlane.xlu2 %643  ;;  %v783_v30 = vsel %vm577_vm7, %v1170_v28, 0.0 }
 0x49b   : > { %v645_v31 = vsub.f32 %v641_v19, %v644_v29  ;;  %784 = vadd.xlane.f32.xlu2 %v783_v30  ;;  %v912_v19 = vld [vmem:[%s1618_s9 + $0x68] sm:$0xff]  ;;  %v902_v29 = vld [vmem:[%s1618_s9 + $0x18] sm:$0xff]  ;;  %v899_v30 = vld [vmem:[%s1618_s9] sm:$0xff] }
 0x49d   : > { %v646_v32 = vmul.f32 1.442695, %v645_v31  ;;  %v900_v31 = vld [vmem:[%s1618_s9 + $0x8] sm:$0xff] }
 0x49f   : > { %1171 = vpow2.f32 %v646_v32  ;;  %v1013_v32 = vld [vmem:[%s1620_s11 + $0xf8] sm:$0xff] }
 0x4a0   : > { %1038 = vmatpush.msrb.mxu3 %v1013_v32 }
 0x4a1   : > { %v722_v49 = vpop.permute.xlu0 %721 }
 0x4a2   : > { %v712_v33 = vpop.xlane.xlu1 %711 }
 0x4a3   : > { %v713_v34 = vsub.f32 %v709_v23, %v712_v33  ;;  %v908_v23 = vld [vmem:[%s1618_s9 + $0x48] sm:$0xff]  ;;  %v1012_v33 = vld [vmem:[%s1620_s11 + $0xf0] sm:$0xff] }
 0x4a4   : > { %1039 = vmatpush.msrb.mxu3 %v1012_v33 }
 0x4a5   : > { %v1172_v35 = vpop.eup %1171  ;;  %v714_v36 = vmul.f32 1.442695, %v713_v34  ;;  %v997_v34 = vld [vmem:[%s1620_s11 + $0x78] sm:$0xff] }
 0x4a6   : > { %v648_v37 = vsel %vm577_vm7, %v1172_v35, 0.0  ;;  %1018 = vmatpush.msrb.mxu1 %v997_v34 }
 0x4a7   : > { %1173 = vpow2.f32 %v714_v36  ;;  %649 = vadd.xlane.f32.xlu1 %v648_v37 }
 0x4ad   : > { %v1174_v38 = vpop.eup %1173 }
 0x4ae   : > { %v716_v39 = vsel %vm577_vm7, %v1174_v38, 0.0 }
 0x4af   : > { %717 = vadd.xlane.f32.xlu1 %v716_v39 }
 0x4b3   : > { %788 = vrot.lane.b32.xlu2 %v1358_v51, %s1201_s15  ;;  %s435_s15 = scalar_lea.vmem %s1622_s13, %s1118_s27 }
 0x4c8   : > { %654 = vrot.lane.b32.xlu1 %v1358_v51, %s1196_s24 }
 0x50e   : > { %v785_v40 = vpop.xlane.xlu2 %784 }
 0x50f   : > { %1175 = vrcp.f32 %v785_v40 }
 0x515   : > { %v1176_v41 = vpop.eup %1175 }
 0x516   : > { %v787_v42 = vmul.f32 %v1176_v41, %v1170_v28  ;;  %v789_v43 = vpop.permute.xlu2 %788  ;;  %v901_v28 = vld [vmem:[%s1618_s9 + $0x10] sm:$0xff] }
 0x517   : > { %809 = vmatpush.msra.mxu0 %v789_v43 }
 0x518   : > { %1133 = vmatmul.msk.f32.vlgmr.msra.gmra.mxu0 %vm577_vm7, %v787_v42 }
 0x51a   : > { %v650_v44 = vpop.xlane.xlu1 %649 }
 0x51b   : > { %1177 = vrcp.f32 %v650_v44 }
 0x521   : > { %v1178_v46 = vpop.eup %1177 }
 0x522   : > { %v718_v45 = vpop.xlane.xlu1 %717  ;;  %v652_v48 = vmul.f32 %v1178_v46, %v1172_v35  ;;  %v1011_v35 = vld [vmem:[%s1620_s11 + $0xe8] sm:$0xff] }
 0x523   : > { %1179 = vrcp.f32 %v718_v45  ;;  %1040 = vmatpush.msrb.mxu3 %v1011_v35 }
 0x529   : > { %v1180_v50 = vpop.eup %1179 }
 0x52a   : > { %v720_v51 = vmul.f32 %v1180_v50, %v1174_v38  ;;  %v1010_v38 = vld [vmem:[%s1620_s11 + $0xe0] sm:$0xff] }
 0x52b   : > { %1041 = vmatpush.msrb.mxu3 %v1010_v38 }
 0x53a   : > { %v655_v47 = vpop.permute.xlu1 %654 }
 0x53b   : > { %675 = vmatpush.msrb.mxu2 %v655_v47 }
 0x53c   : > { %1127 = vmatmul.msk.f32.vlgmr.msrb.gmra.mxu2 %vm577_vm7, %v652_v48  ;;  %v1159_v48 = vld [vmem:[%s1617_s8] ss:$0 sm:$0xff] }
 0x53d   : > { %742 = vmatpush.msra.mxu2 %v722_v49 }
 0x53f   : > { %854 = vmatpush.msrb.mxu2 %v838_v55  ;;  %v994_v55 = vld [vmem:[%s1620_s11 + $0x60] sm:$0xff] }
 0x541   : > { %855 = vmatpush.msrb.mxu2 %v837_v56  ;;  %v1007_v56 = vld [vmem:[%s1620_s11 + $0xc8] sm:$0xff] }
 0x543   : > { %856 = vmatpush.msrb.mxu2 %v836_v57  ;;  %v993_v57 = vld [vmem:[%s1620_s11 + $0x58] sm:$0xff] }
 0x544   : > { %1130 = vmatmul.msk.f32.vlgmr.msra.gmra.mxu2 %vm577_vm7, %v720_v51  ;;  %v996_v51 = vld [vmem:[%s1620_s11 + $0x70] sm:$0xff] }
 0x545   : > { %857 = vmatpush.msrb.mxu2 %v835_v58  ;;  %1019 = vmatpush.msrb.mxu1 %v996_v51  ;;  %v1006_v58 = vld [vmem:[%s1620_s11 + $0xc0] sm:$0xff] }
 0x547   : > { %858 = vmatpush.msrb.mxu2 %v834_v59  ;;  %v992_v59 = vld [vmem:[%s1620_s11 + $0x50] sm:$0xff] }
 0x549   : > { %859 = vmatpush.msrb.mxu2 %v833_v60  ;;  %v1005_v60 = vld [vmem:[%s1620_s11 + $0xb8] sm:$0xff] }
 0x54b   : > { %860 = vmatpush.msrb.mxu2 %v832_v61  ;;  %v991_v61 = vld [vmem:[%s1620_s11 + $0x48] sm:$0xff] }
 0x54d   : > { %861 = vmatpush.msrb.mxu2 %v831_v62  ;;  %v1004_v62 = vld [vmem:[%s1620_s11 + $0xb0] sm:$0xff] }
 0x54f   : > { %932 = vmatpush.msra.mxu2 %v913_v17  ;;  %v982_v17 = vld [vmem:[%s1620_s11] sm:$0xff] }
 0x551   : > { %933 = vmatpush.msra.mxu2 %v911_v18 }
 0x553   : > { %934 = vmatpush.msra.mxu2 %v909_v20 }
 0x555   : > { %935 = vmatpush.msra.mxu2 %v907_v22 }
 0x557   : > { %936 = vmatpush.msra.mxu2 %v905_v24 }
 0x559   : > { %937 = vmatpush.msra.mxu2 %v903_v26 }
 0x55b   : > { %938 = vmatpush.msra.mxu2 %v901_v28 }
 0x55d   : > { %939 = vmatpush.msra.mxu2 %v899_v30 }
 0x595   : > { %v811_v52 = vpop.f32.mrf.mxu0 }
 0x596   : > { %823 = vrot.lane.b32.xlu0 %v811_v52, %s1197_s28  ;;  %v1009_v52 = vld [vmem:[%s1620_s11 + $0xd8] sm:$0xff] }
 0x597   : > { %1042 = vmatpush.msrb.mxu3 %v1009_v52 }
 0x5bf   : > { %v677_v53 = vpop.f32.mrf.mxu2 }
 0x5c0   : > { %815 = vrot.lane.b32.xlu1 %v677_v53, %s1202_s16  ;;  %v995_v53 = vld [vmem:[%s1620_s11 + $0x68] sm:$0xff] }
 0x5c1   : > { %1020 = vmatpush.msrb.mxu1 %v995_v53 }
 0x5c3   : > { %1021 = vmatpush.msrb.mxu1 %v994_v55 }
 0x5c5   : > { %1022 = vmatpush.msrb.mxu1 %v993_v57 }
 0x5c7   : > { %v744_v54 = vpop.f32.mrf.mxu2  ;;  %1023 = vmatpush.msrb.mxu1 %v992_v59 }
 0x5c8   : > { %819 = vrot.lane.b32.xlu1 %v744_v54, %s1200_s14  ;;  %v1008_v54 = vld [vmem:[%s1620_s11 + $0xd0] sm:$0xff] }
 0x5c9   : > { %1043 = vmatpush.msrb.mxu3 %v1008_v54  ;;  %1024 = vmatpush.msrb.mxu1 %v991_v61 }
 0x5cb   : > { %1044 = vmatpush.msrb.mxu3 %v1007_v56 }
 0x5cd   : > { %1045 = vmatpush.msrb.mxu3 %v1006_v58 }
 0x5cf   : > { %1046 = vmatpush.msrb.mxu3 %v1005_v60 }
 0x5d1   : > { %1047 = vmatpush.msrb.mxu3 %v1004_v62 }
 0x608   : > { %v824_v3 = vpop.permute.xlu0 %823 }
 0x632   : > { %v816_v63 = vpop.permute.xlu1 %815 }
 0x633   : > { %v826_v1 = vsel %vm550_vm5, %v1380_v15, %v816_v63  ;;  %v990_v63 = vld [vmem:[%s1620_s11 + $0x40] sm:$0xff] }
 0x634   : > { %1025 = vmatpush.msrb.mxu1 %v990_v63 }
 0x63a   : > { %v820_v2 = vpop.permute.xlu1 %819 }
 0x63b   : > { %v828_v4 = vsel %vm827_vm8, %v826_v1, %v820_v2  ;;  %v1003_v1 = vld [vmem:[%s1620_s11 + $0xa8] sm:$0xff]  ;;  %v989_v2 = vld [vmem:[%s1620_s11 + $0x38] sm:$0xff] }
 0x63c   : > { %v830_v5 = vsel %vm829_vm9, %v828_v4, %v824_v3  ;;  %1048 = vmatpush.msrb.mxu3 %v1003_v1  ;;  %v1002_v3 = vld [vmem:[%s1620_s11 + $0xa0] sm:$0xff]  ;;  %v988_v4 = vld [vmem:[%s1620_s11 + $0x30] sm:$0xff]  ;;  %1026 = vmatpush.msrb.mxu1 %v989_v2 }
 0x63d   : > { %1134 = vmatmul.msk.f32.vlgmr.msrb.gmra.mxu2 %vm437_vm0, %v830_v5  ;;  %v1001_v5 = vld [vmem:[%s1620_s11 + $0x98] sm:$0xff] }
 0x63e   : > { %1049 = vmatpush.msrb.mxu3 %v1002_v3  ;;  %1027 = vmatpush.msrb.mxu1 %v988_v4 }
 0x640   : > { %1050 = vmatpush.msrb.mxu3 %v1001_v5 }
 0x6c0   : > { %v863_v7 = vpop.f32.mrf.mxu2 }
 0x6c1   : > { %v864_v9 = vadd.f32 %v1157_v6, %v863_v7  ;;  %v987_v6 = vld [vmem:[%s1620_s11 + $0x28] sm:$0xff]  ;;  %v1000_v7 = vld [vmem:[%s1620_s11 + $0x90] sm:$0xff] }
 0x6c2   : > { %1028 = vmatpush.msrb.mxu1 %v987_v6  ;;  %1051 = vmatpush.msrb.mxu3 %v1000_v7 }
 0x6c3   : > { %v1433_v10 = vadd.f32 %v864_v9, %v1289_v0  ;;  %v914_v0 = vld [vmem:[%s1618_s9 + $0x78] sm:$0xff]  ;;  %v986_v9 = vld [vmem:[%s1620_s11 + $0x20] sm:$0xff] }
 0x6c4   : > { %952 = vmatpush.msrb.mxu0 %v914_v0  ;;  %1029 = vmatpush.msrb.mxu1 %v986_v9 }
 0x6c5   : > { %v867_v11 = vsel %vm437_vm0, %v1433_v10, 0.0 }
 0x6c6   : > { %868 = vadd.xlane.f32.xlu1 %v867_v11  ;;  %953 = vmatpush.msrb.mxu0 %v912_v19  ;;  %v999_v11 = vld [vmem:[%s1620_s11 + $0x88] sm:$0xff] }
 0x6c7   : > { %1052 = vmatpush.msrb.mxu3 %v999_v11 }
 0x6c8   : > { %954 = vmatpush.msrb.mxu0 %v910_v21 }
 0x6ca   : > { %955 = vmatpush.msrb.mxu0 %v908_v23 }
 0x6cc   : > { %956 = vmatpush.msrb.mxu0 %v906_v25 }
 0x6ce   : > { %957 = vmatpush.msrb.mxu0 %v904_v27 }
 0x6d0   : > { %958 = vmatpush.msrb.mxu0 %v902_v29 }
 0x6d2   : > { %959 = vmatpush.msrb.mxu0 %v900_v31 }
 0x739   : > { %v869_v12 = vpop.xlane.xlu1 %868 }
 0x73a   : > { %v870_v13 = vmul.f32 %v869_v12, %v1293_v8  ;;  %v985_v12 = vld [vmem:[%s1620_s11 + $0x18] sm:$0xff] }
 0x73b   : > { %1030 = vmatpush.msrb.mxu1 %v985_v12 }
 0x73c   : > { %v871_v14 = vsub.f32 %v1433_v10, %v870_v13  ;;  %v998_v13 = vld [vmem:[%s1620_s11 + $0x80] sm:$0xff] }
 0x73d   : > { %1053 = vmatpush.msrb.mxu3 %v998_v13 }
 0x73e   : > { %v872_v15 = vmul.f32 %v871_v14, %v871_v14 }
 0x740   : > { %v873_v16 = vsel %vm437_vm0, %v872_v15, 0.0  ;;  %v983_v15 = vld [vmem:[%s1620_s11 + $0x8] sm:$0xff] }
 0x741   : > { %874 = vadd.xlane.f32.xlu2 %v873_v16  ;;  %v915_v16 = vld [vmem:[%s1619_s10] sm:$0x3] }
 0x742   : > { %v918_v0 = vperm.slane %v915_v16, 1  ;;  %v917_v21 = vperm.slane %v915_v16, 0 }
 0x7b4   : > { %v875_v36 = vpop.xlane.xlu2 %874 }
 0x7b5   : > { %v876_v37 = vmul.f32 %v875_v36, %v1293_v8  ;;  %v1158_v8 = vld [vmem:[%s1616_s7] ss:$0 sm:$0xff] }
 0x7b7   : > { %v877_v39 = vadd.f32 1e-05, %v876_v37 }
 0x7b9   : > { %1181 = vrsqrt.f32 %v877_v39  ;;  %vm884_vm11 = vweird.f32 %v877_v39 }
 0x7bf   : > { %v1182_v40 = vpop.eup %1181 }
 0x7c0   : > { %v879_v41 = vmul.f32 %v1182_v40, %v877_v39  ;;  %vm885_vm10 = vweird.f32 %v1182_v40 }
 0x7c1   : > { %vm886_vm12 = vmor %vm884_vm11, %vm885_vm10 }
 0x7c2   : > { %v880_v42 = vmul.f32 %v1182_v40, %v879_v41  ;;  %v1160_v41 = vld [vmem:[%s1621_s12] ss:$0 sm:$0xff] }
 0x7c4   : > { %v881_v43 = vmul.f32 0.5, %v880_v42 }
 0x7c6   : > { %v882_v44 = vsub.f32 1.5, %v881_v43 }
 0x7c8   : > { %v883_v45 = vmul.f32 %v1182_v40, %v882_v44 }
 0x7ca   : > { %v887_v46 = vsel %vm886_vm12, %v1182_v40, %v883_v45 }
 0x7cb   : > { %v888_v47 = vmul.f32 %v887_v46, %v871_v14  ;;  %v984_v14 = vld [vmem:[%s1620_s11 + $0x10] sm:$0xff] }
 0x7cc   : > { %1031 = vmatpush.msrb.mxu1 %v984_v14 }
 0x7cd   : > { %v893_v49 = vmul.f32 %v1158_v8, %v888_v47 }
 0x7ce   : > { %1032 = vmatpush.msrb.mxu1 %v983_v15 }
 0x7cf   : > { %v898_v50 = vadd.f32 %v1159_v48, %v893_v49 }
 0x7d0   : > { %1033 = vmatpush.msrb.mxu1 %v982_v17 }
 0x7d1   : > { %1135 = vmatmul.msk.f32.vlgmr.msra.gmra.mxu2 %vm437_vm0, %v898_v50  ;;  %1136 = vmatmul.msk.f32.vlgmr.msrb.gmra.mxu0 %vm437_vm0, %v898_v50 }
 0x84e   : > { %v961_v18 = vpop.f32.mrf.mxu0 }
 0x84f   : > { %v962_v19 = vadd.f32 %v961_v18, %v918_v0 }
 0x851   : > { %v967_v20 = vmul.f32 %v962_v19, %v962_v19  ;;  %v965_v34 = vmul.f32 0.5, %v962_v19 }
 0x853   : > { %v969_v22 = vmul.f32 %v967_v20, %v962_v19 }
 0x854   : > { %v941_v23 = vpop.f32.mrf.mxu2 }
 0x855   : > { %v971_v24 = vmul.f32 0.044715, %v969_v22  ;;  %v942_v25 = vadd.f32 %v941_v23, %v917_v21 }
 0x857   : > { %v973_v26 = vadd.f32 %v971_v24, %v962_v19  ;;  %v966_v27 = vmul.f32 %v942_v25, %v942_v25  ;;  %v964_v38 = vmul.f32 0.5, %v942_v25 }
 0x859   : > { %v975_v28 = vmul.f32 0.7978846, %v973_v26  ;;  %v968_v29 = vmul.f32 %v966_v27, %v942_v25 }
 0x85b   : > { %1183 = vtanh.f32 %v975_v28  ;;  %v970_v30 = vmul.f32 0.044715, %v968_v29 }
 0x85d   : > { %v972_v31 = vadd.f32 %v970_v30, %v942_v25 }
 0x85f   : > { %v974_v32 = vmul.f32 0.7978846, %v972_v31 }
 0x861   : > { %v1184_v33 = vpop.eup %1183  ;;  %1185 = vtanh.f32 %v974_v32 }
 0x862   : > { %v979_v35 = vadd.f32 1.0, %v1184_v33 }
 0x864   : > { %v981_v36 = vmul.f32 %v979_v35, %v965_v34 }
 0x866   : > { %1054 = vmatmul.f32.vlgmr.msrb.gmra.mxu3 %v981_v36 }
 0x867   : > { %v1186_v37 = vpop.eup %1185 }
 0x868   : > { %v978_v39 = vadd.f32 1.0, %v1186_v37 }
 0x86a   : > { %v980_v40 = vmul.f32 %v978_v39, %v964_v38 }
 0x86c   : > { %1034 = vmatmul.f32.vlgmr.msrb.gmra.mxu1 %v980_v40 }
 0x8e9   : > { %v1035_v42 = vpop.f32.mrf.mxu1  ;;  %v1055_v44 = vpop.f32.mrf.mxu3 }
 0x8ea   : > { %v1036_v43 = vadd.f32 %v1160_v41, %v1035_v42 }
 0x8ec   : > { %v1056_v45 = vadd.f32 %v1055_v44, %v1036_v43 }
 0x8ee   : > { %v1058_v8 = vadd.f32 %v1056_v45, %v1433_v10 }
 0x8f0   : > { %1059 = vst.msk [vmem:[%s435_s15] sm:$0xff] %vm437_vm0, %v1058_v8 }
 0x8f1 PF: > { %s23_s25 = sadd.s32 1, %s1193_s25  }
 0x8f2   : > { %p20_p4 = scmp.ge.s32.totalorder %s23_s25, 4  }
 0x8f4   :  { %22 = sbr.rel (!%p20_p4) target bundleno = 1 (0x1), region = 102 }

</bundles_post_ra>
